<compile_context>
chip_gen: v7x
topology: tpu7x:2x2x1
jax: 0.10.0
libtpu: 0.0.40
codegen_flags: <defaults>
</compile_context>

<pallas_src>
import functools

import jax
import jax.numpy as jnp
from jax import lax
from jax.experimental import pallas as pl
from jax.experimental.pallas import tpu as pltpu


def layernorm_kernel(x_ref, w_ref, b_ref, o_ref, *, eps):
    x = x_ref[...].astype(jnp.float32)                      # (tm, H)
    h = x.shape[-1]
    inv_h = 1.0 / h

    # Two-pass, centered moments (torch.nn.LayerNorm semantics, biased var).
    mean = jnp.sum(x, axis=-1, keepdims=True) * inv_h       # (tm, 1)
    xc = x - mean
    var = jnp.sum(xc * xc, axis=-1, keepdims=True) * inv_h  # (tm, 1)
    inv = lax.rsqrt(var + eps)                               # EUP, (tm, 1)

    w = w_ref[...].astype(jnp.float32)                       # (1, H)
    b = b_ref[...].astype(jnp.float32)                       # (1, H)

    o_ref[...] = (xc * inv * w + b).astype(o_ref.dtype)


def _pick_tile_rows(R):
    """Single block on 1-TC chips; split rows across the 2 TCs on v7x."""
    tm = R
    try:
        kind = jax.devices()[0].device_kind.lower()
    except Exception:  # pragma: no cover - defensive, never fail tile pick
        kind = ""
    if "v7" in kind and R % 2 == 0 and (R // 2) % 8 == 0:
        tm = R // 2
    return tm


def layernorm(x, weight, bias, *, eps=1e-12, tm=None):
    # x: (B, S, H); weight, bias: (H,)
    B, S, H = x.shape
    R = B * S
    if tm is None:
        tm = _pick_tile_rows(R)
    assert R % tm == 0, "row count must be divisible by the tile size"

    x2 = x.reshape(R, H)                 # metadata-only
    w2 = weight.reshape(1, H)            # metadata-only (no stack/concat launch)
    b2 = bias.reshape(1, H)

    bytes_accessed = (2 * R * H + 2 * H) * x.dtype.itemsize
    cost = pl.CostEstimate(
        flops=7 * R * H,
        transcendentals=R,               # one rsqrt per row
        bytes_accessed=bytes_accessed,
    )

    out = pl.pallas_call(
        functools.partial(layernorm_kernel, eps=eps),
        out_shape=jax.ShapeDtypeStruct((R, H), x.dtype),
        grid_spec=pltpu.PrefetchScalarGridSpec(
            num_scalar_prefetch=0,
            grid=(R // tm,),
            in_specs=[
                pl.BlockSpec((tm, H), lambda i: (i, 0)),
                pl.BlockSpec((1, H), lambda i: (0, 0)),
                pl.BlockSpec((1, H), lambda i: (0, 0)),
            ],
            out_specs=pl.BlockSpec((tm, H), lambda i: (i, 0)),
        ),
        compiler_params=pltpu.CompilerParams(
            dimension_semantics=("parallel",),
        ),
        cost_estimate=cost,
    )(x2, w2, b2)
    return out.reshape(B, S, H)


if __name__ == "__main__":
    key = jax.random.PRNGKey(0)
    kx, kw, kb = jax.random.split(key, 3)

    B, S, H = 1, 384, 256
    x = jax.random.normal(kx, (B, S, H), dtype=jnp.float32)

    # PyTorch default init is weight=1, bias=0; perturb deterministically so
    # the affine path is exercised.
    weight = jnp.ones((H,), jnp.float32) + 0.01 * jax.random.normal(kw, (H,), jnp.float32)
    bias = 0.01 * jax.random.normal(kb, (H,), jnp.float32)

    out = layernorm(x, weight, bias)
    out = jax.block_until_ready(out)

    # Reference check in plain JAX (same semantics as torch.nn.LayerNorm).
    mean = jnp.mean(x, axis=-1, keepdims=True)
    var = jnp.mean((x - mean) ** 2, axis=-1, keepdims=True)
    ref = (x - mean) / jnp.sqrt(var + 1e-12) * weight + bias
    assert out.shape == (B, S, H)
    assert jnp.max(jnp.abs(out - ref)) < 1e-4

    print("KERNEL_OK")
</pallas_src>

<mosaic_0001>
module attributes {stable_mosaic.version = 11 : i64} {
  func.func @layernorm_kernel(%arg0: i32, %arg1: memref<384x256xf32, #tpu.memory_space<vmem>>, %arg2: memref<1x256xf32, #tpu.memory_space<vmem>>, %arg3: memref<1x256xf32, #tpu.memory_space<vmem>>, %arg4: memref<384x256xf32, #tpu.memory_space<vmem>>) attributes {dimension_semantics = [#tpu.dimension_semantics<parallel>], iteration_bounds = array<i64: 1>, scalar_prefetch = 0 : i64, scratch_operands = 0 : i64, tpu.core_type = #tpu.core_type<tc>, window_params = [{transform_indices = @transform_0, window_bounds = array<i64: 384, 256>}, {pipeline_mode = #tpu.pipeline_mode<synchronous>, transform_indices = @transform_1, window_bounds = array<i64: 1, 256>}, {pipeline_mode = #tpu.pipeline_mode<synchronous>, transform_indices = @transform_2, window_bounds = array<i64: 1, 256>}, {transform_indices = @transform_3, window_bounds = array<i64: 384, 256>}]} {
    %c0 = arith.constant 0 : index
    %c0_0 = arith.constant 0 : index
    %0 = vector.load %arg1[%c0, %c0_0] : memref<384x256xf32, #tpu.memory_space<vmem>>, vector<384x256xf32>
    %cst = arith.constant dense<0.000000e+00> : vector<384xf32>
    %1 = vector.multi_reduction <add>, %0, %cst [1] : vector<384x256xf32> to vector<384xf32>
    %2 = vector.shape_cast %1 : vector<384xf32> to vector<384x1xf32>
    %cst_1 = arith.constant 3.906250e-03 : f32
    %3 = vector.broadcast %cst_1 : f32 to vector<384x1xf32>
    %4 = arith.mulf %2, %3 : vector<384x1xf32>
    %5 = vector.broadcast %4 : vector<384x1xf32> to vector<384x256xf32>
    %6 = arith.subf %0, %5 : vector<384x256xf32>
    %7 = arith.mulf %6, %6 : vector<384x256xf32>
    %cst_2 = arith.constant dense<0.000000e+00> : vector<384xf32>
    %8 = vector.multi_reduction <add>, %7, %cst_2 [1] : vector<384x256xf32> to vector<384xf32>
    %9 = vector.shape_cast %8 : vector<384xf32> to vector<384x1xf32>
    %cst_3 = arith.constant 3.906250e-03 : f32
    %10 = vector.broadcast %cst_3 : f32 to vector<384x1xf32>
    %11 = arith.mulf %9, %10 : vector<384x1xf32>
    %cst_4 = arith.constant 9.99999996E-13 : f32
    %12 = vector.broadcast %cst_4 : f32 to vector<384x1xf32>
    %13 = arith.addf %11, %12 : vector<384x1xf32>
    %14 = math.rsqrt %13 : vector<384x1xf32>
    %c0_5 = arith.constant 0 : index
    %c0_6 = arith.constant 0 : index
    %15 = vector.load %arg2[%c0_5, %c0_6] : memref<1x256xf32, #tpu.memory_space<vmem>>, vector<1x256xf32>
    %c0_7 = arith.constant 0 : index
    %c0_8 = arith.constant 0 : index
    %16 = vector.load %arg3[%c0_7, %c0_8] : memref<1x256xf32, #tpu.memory_space<vmem>>, vector<1x256xf32>
    %17 = vector.broadcast %14 : vector<384x1xf32> to vector<384x256xf32>
    %18 = arith.mulf %6, %17 : vector<384x256xf32>
    %19 = vector.broadcast %15 : vector<1x256xf32> to vector<384x256xf32>
    %20 = arith.mulf %18, %19 : vector<384x256xf32>
    %21 = vector.broadcast %16 : vector<1x256xf32> to vector<384x256xf32>
    %22 = arith.addf %20, %21 : vector<384x256xf32>
    %c0_9 = arith.constant 0 : index
    %c0_10 = arith.constant 0 : index
    %23 = vector.load %arg4[%c0_9, %c0_10] : memref<384x256xf32, #tpu.memory_space<vmem>>, vector<384x256xf32>
    tpu.vector_store %arg4[%c0_9, %c0_10], %22 {strides = array<i32>} : memref<384x256xf32, #tpu.memory_space<vmem>>, vector<384x256xf32>,
    return
  }
  func.func @transform_0(%arg0: i32) -> (i32, i32) {
    %c0_i32 = arith.constant 0 : i32
    %c0_i32_0 = arith.constant 0 : i32
    return %arg0, %c0_i32 : i32, i32
  }
  func.func @transform_1(%arg0: i32) -> (i32, i32) {
    %c0_i32 = arith.constant 0 : i32
    %c0_i32_0 = arith.constant 0 : i32
    %c0_i32_1 = arith.constant 0 : i32
    return %c0_i32, %c0_i32_0 : i32, i32
  }
  func.func @transform_2(%arg0: i32) -> (i32, i32) {
    %c0_i32 = arith.constant 0 : i32
    %c0_i32_0 = arith.constant 0 : i32
    %c0_i32_1 = arith.constant 0 : i32
    return %c0_i32, %c0_i32_0 : i32, i32
  }
  func.func @transform_3(%arg0: i32) -> (i32, i32) {
    %c0_i32 = arith.constant 0 : i32
    %c0_i32_0 = arith.constant 0 : i32
    return %arg0, %c0_i32 : i32, i32
  }
}

</mosaic_0001>

<bundles_post_ra>
// kernel: tpu_custom_call.1
= control target key start
LH: loop header
LB: loop body
LE: loop exit
PB: predicated region body
PF: predicated region fallthrough
CT: control target
= control target key end

     0   :  { %8 = vsyncpa [#allocation3], 0  ;;  %s2515_s0 = inlined_call_operand.hbm [shape: f32[384,256], index: 0, kind: input, shape index: {}]   ;;  %s2516_s1 = inlined_call_operand.vmem [shape: f32[1,256], index: 1, kind: input, shape index: {}]   ;;  %s2517_s2 = inlined_call_operand.vmem [shape: f32[1,256], index: 2, kind: input, shape index: {}]   ;;  %s2518_s3 = inlined_call_operand.hbm [shape: f32[384,256], index: 3, kind: output, shape index: {}]  }
   0x1   :  { %9 = vsyncpa [#allocation4], 0  ;;  %s1370_s12 = smov [#allocation2]   ;;  %s1322_s16 = scalar_lea.hbm %s2515_s0, 12288 }
   0x2   :  { %s15_s13 = sshll.u32 %s1370_s12, 4  ;;  %p1323_p0 = scmp.ne.s32.totalorder %s2515_s0, %s1322_s16  ;;  %s16_s13 = int_to_ptr.vmem [resolvable:$true] %s15_s13 }
   0x3   :  { %p1326_p1 = scmp.lt.u32.totalorder %s1322_s16, %s2515_s0 }
   0x5   :  { %p1328_p2 = pnand %p1326_p1, %p1323_p0 }
   0x7   :  { %1331 = shalt.err (!%p1328_p2)
}
   0x8   :  { %s1332_s21 = scalar_lea.vmem %s16_s13, 12288  ;;  %p1337_p4 = scmp.lt.s32.totalorder %s16_s13, %s16_s13 }
   0x9   :  { %p1333_p3 = scmp.ne.s32.totalorder %s16_s13, %s1332_s21  ;;  %p1338_p5 = scmp.lt.s32.totalorder %s1332_s21, %s1332_s21 }
   0xb   :  { %p1339_p6 = por %p1338_p5, %p1337_p4 }
   0xd   :  { %p1340_p7 = pnand %p1339_p6, %p1333_p3 }
   0xf   :  { %1343 = shalt.err (!%p1340_p7)
}
  0x10   :  { %s1371_s22 = smov 256   ;;  %s1372_s23 = smov 16  }
  0x11   :  { %21 = dma.hbm_to_vmem [thread:$0]  %s2515_s0, 12288, %s16_s13, [#allocation3], %s1371_s22, %s1371_s22, %s1372_s23  }
  0x12   :  { %1366 = dma.done.wait [#allocation3], 12288  }
  0x13   :  { %1367 = vsyncadd [#allocation3], 4294955008  ;;  %v1409_v0 = vld [vmem:[#allocation2] sm:$0xff]  ;;  %v1411_v1 = vld [vmem:[#allocation2 + $0x8] sm:$0xff] }
  0x14   :  { %v1413_v2 = vld [vmem:[#allocation2 + $0x20] sm:$0xff]  ;;  %v125_v3 = vadd.f32 %v1411_v1, %v1409_v0  ;;  %v1417_v4 = vld [vmem:[#allocation2 + $0x28] sm:$0xff]  ;;  %v1419_v5 = vld [vmem:[#allocation2 + $0x10] sm:$0xff] }
  0x15   :  { %v1421_v6 = vld [vmem:[#allocation2 + $0x18] sm:$0xff]  ;;  %v131_v7 = vadd.f32 %v1417_v4, %v1413_v2  ;;  %v1425_v8 = vld [vmem:[#allocation2 + $0x30] sm:$0xff]  ;;  %v1433_v12 = vld [vmem:[#allocation2 + $0x40] sm:$0xff] }
  0x16   :  { %v1427_v9 = vld [vmem:[#allocation2 + $0x38] sm:$0xff]  ;;  %126 = vadd.xlane.f32.xlu0 %v125_v3  ;;  %v128_v10 = vadd.f32 %v1421_v6, %v1419_v5  ;;  %v1435_v13 = vld [vmem:[#allocation2 + $0x48] sm:$0xff]  ;;  %v1437_v14 = vld [vmem:[#allocation2 + $0x50] sm:$0xff] }
  0x17   :  { %132 = vadd.xlane.f32.xlu1 %v131_v7  ;;  %v134_v11 = vadd.f32 %v1427_v9, %v1425_v8  ;;  %v1439_v15 = vld [vmem:[#allocation2 + $0x58] sm:$0xff]  ;;  %v137_v16 = vadd.f32 %v1435_v13, %v1433_v12  ;;  %v1445_v18 = vld [vmem:[#allocation2 + $0x60] sm:$0xff]  ;;  %v1447_v19 = vld [vmem:[#allocation2 + $0x68] sm:$0xff] }
  0x18   :  { %v140_v17 = vadd.f32 %v1439_v15, %v1437_v14  ;;  %v1449_v20 = vld [vmem:[#allocation2 + $0x70] sm:$0xff]  ;;  %v1451_v21 = vld [vmem:[#allocation2 + $0x78] sm:$0xff]  ;;  %v143_v22 = vadd.f32 %v1447_v19, %v1445_v18  ;;  %v1457_v24 = vld [vmem:[#allocation2 + $0x80] sm:$0xff] }
  0x19   :  { %v146_v23 = vadd.f32 %v1451_v21, %v1449_v20  ;;  %v1459_v25 = vld [vmem:[#allocation2 + $0x88] sm:$0xff]  ;;  %v1461_v26 = vld [vmem:[#allocation2 + $0x90] sm:$0xff]  ;;  %v1463_v27 = vld [vmem:[#allocation2 + $0x98] sm:$0xff] }
  0x1a   :  { %129 = vadd.xlane.f32.xlu0 %v128_v10  ;;  %v149_v28 = vadd.f32 %v1459_v25, %v1457_v24  ;;  %v152_v29 = vadd.f32 %v1463_v27, %v1461_v26  ;;  %v1469_v30 = vld [vmem:[#allocation2 + $0xa0] sm:$0xff]  ;;  %v1471_v31 = vld [vmem:[#allocation2 + $0xa8] sm:$0xff]  ;;  %v1473_v32 = vld [vmem:[#allocation2 + $0xb0] sm:$0xff] }
  0x1b   :  { %135 = vadd.xlane.f32.xlu1 %v134_v11  ;;  %v1475_v33 = vld [vmem:[#allocation2 + $0xb8] sm:$0xff]  ;;  %v155_v34 = vadd.f32 %v1471_v31, %v1469_v30  ;;  %v1481_v36 = vld [vmem:[#allocation2 + $0xc0] sm:$0xff]  ;;  %v1483_v37 = vld [vmem:[#allocation2 + $0xc8] sm:$0xff] }
  0x1c   :  { %v158_v35 = vadd.f32 %v1475_v33, %v1473_v32  ;;  %v1485_v38 = vld [vmem:[#allocation2 + $0xd0] sm:$0xff]  ;;  %v1487_v39 = vld [vmem:[#allocation2 + $0xd8] sm:$0xff]  ;;  %v161_v40 = vadd.f32 %v1483_v37, %v1481_v36  ;;  %v1493_v42 = vld [vmem:[#allocation2 + $0xe0] sm:$0xff] }
  0x1d   :  { %v164_v41 = vadd.f32 %v1487_v39, %v1485_v38  ;;  %v1495_v43 = vld [vmem:[#allocation2 + $0xe8] sm:$0xff]  ;;  %v1497_v44 = vld [vmem:[#allocation2 + $0xf0] sm:$0xff]  ;;  %v1499_v45 = vld [vmem:[#allocation2 + $0xf8] sm:$0xff] }
  0x1e   :  { %138 = vadd.xlane.f32.xlu0 %v137_v16  ;;  %v167_v46 = vadd.f32 %v1495_v43, %v1493_v42  ;;  %v170_v47 = vadd.f32 %v1499_v45, %v1497_v44  ;;  %v1505_v48 = vld [vmem:[#allocation2 + $0x100] sm:$0xff]  ;;  %v1507_v49 = vld [vmem:[#allocation2 + $0x108] sm:$0xff]  ;;  %v1509_v50 = vld [vmem:[#allocation2 + $0x110] sm:$0xff] }
  0x1f   :  { %141 = vadd.xlane.f32.xlu1 %v140_v17  ;;  %v1511_v51 = vld [vmem:[#allocation2 + $0x118] sm:$0xff]  ;;  %v173_v52 = vadd.f32 %v1507_v49, %v1505_v48  ;;  %v1517_v54 = vld [vmem:[#allocation2 + $0x120] sm:$0xff]  ;;  %v1519_v55 = vld [vmem:[#allocation2 + $0x128] sm:$0xff] }
  0x20   :  { %v176_v53 = vadd.f32 %v1511_v51, %v1509_v50  ;;  %v1521_v56 = vld [vmem:[#allocation2 + $0x130] sm:$0xff]  ;;  %v1523_v57 = vld [vmem:[#allocation2 + $0x138] sm:$0xff]  ;;  %v179_v58 = vadd.f32 %v1519_v55, %v1517_v54  ;;  %v1529_v60 = vld [vmem:[#allocation2 + $0x140] sm:$0xff] }
  0x21   :  { %v182_v59 = vadd.f32 %v1523_v57, %v1521_v56  ;;  %v1531_v61 = vld [vmem:[#allocation2 + $0x148] sm:$0xff]  ;;  %v1533_v62 = vld [vmem:[#allocation2 + $0x150] sm:$0xff]  ;;  %v1535_v63 = vld [vmem:[#allocation2 + $0x158] sm:$0xff] }
  0x22   :  { %144 = vadd.xlane.f32.xlu0 %v143_v22  ;;  %v185_v3 = vadd.f32 %v1531_v61, %v1529_v60  ;;  %v188_v7 = vadd.f32 %v1535_v63, %v1533_v62  ;;  %v1541_v10 = vld [vmem:[#allocation2 + $0x160] sm:$0xff]  ;;  %v1543_v11 = vld [vmem:[#allocation2 + $0x168] sm:$0xff]  ;;  %v1545_v16 = vld [vmem:[#allocation2 + $0x170] sm:$0xff] }
  0x23   :  { %147 = vadd.xlane.f32.xlu1 %v146_v23  ;;  %v1547_v17 = vld [vmem:[#allocation2 + $0x178] sm:$0xff]  ;;  %v191_v22 = vadd.f32 %v1543_v11, %v1541_v10 }
  0x24   :  { %v194_v23 = vadd.f32 %v1547_v17, %v1545_v16 }
  0x26   :  { %150 = vadd.xlane.f32.xlu0 %v149_v28  ;;  %v1553_v28 = vld [vmem:[#allocation2 + $0x180] sm:$0xff] }
  0x27   :  { %153 = vadd.xlane.f32.xlu1 %v152_v29  ;;  %v1555_v29 = vld [vmem:[#allocation2 + $0x188] sm:$0xff] }
  0x2a   :  { %156 = vadd.xlane.f32.xlu0 %v155_v34  ;;  %v1557_v34 = vld [vmem:[#allocation2 + $0x190] sm:$0xff] }
  0x2b   :  { %159 = vadd.xlane.f32.xlu1 %v158_v35  ;;  %2619 = vst [vmem:[#allocation8_spill] sm:$0xff] %v1557_v34  ;;  %v1559_v35 = vld [vmem:[#allocation2 + $0x198] sm:$0xff] }
  0x2c   :  { %2620 = vst [vmem:[#allocation9_spill] sm:$0xff] %v1559_v35 }
  0x2e   :  { %162 = vadd.xlane.f32.xlu0 %v161_v40  ;;  %v197_v40 = vadd.f32 %v1555_v29, %v1553_v28 }
  0x2f   :  { %165 = vadd.xlane.f32.xlu1 %v164_v41  ;;  %v200_v41 = vadd.f32 %v1559_v35, %v1557_v34 }
  0x32   :  { %168 = vadd.xlane.f32.xlu0 %v167_v46  ;;  %v1565_v46 = vld [vmem:[#allocation2 + $0x1a0] sm:$0xff] }
  0x33   :  { %171 = vadd.xlane.f32.xlu1 %v170_v47  ;;  %2621 = vst [vmem:[#allocation10_spill] sm:$0xff] %v1565_v46  ;;  %v1567_v47 = vld [vmem:[#allocation2 + $0x1a8] sm:$0xff] }
  0x34   :  { %2622 = vst [vmem:[#allocation11_spill] sm:$0xff] %v1567_v47 }
  0x36   :  { %174 = vadd.xlane.f32.xlu0 %v173_v52  ;;  %v1569_v52 = vld [vmem:[#allocation2 + $0x1b0] sm:$0xff] }
  0x37   :  { %177 = vadd.xlane.f32.xlu1 %v176_v53  ;;  %2623 = vst [vmem:[#allocation12_spill] sm:$0xff] %v1569_v52  ;;  %v1571_v53 = vld [vmem:[#allocation2 + $0x1b8] sm:$0xff] }
  0x38   :  { %2624 = vst [vmem:[#allocation13_spill] sm:$0xff] %v1571_v53 }
  0x3a   :  { %180 = vadd.xlane.f32.xlu0 %v179_v58  ;;  %v203_v58 = vadd.f32 %v1567_v47, %v1565_v46  ;;  %v1591_v47 = vld [vmem:[#allocation2 + $0x1e8] sm:$0xff] }
  0x3b   :  { %183 = vadd.xlane.f32.xlu1 %v182_v59  ;;  %v206_v59 = vadd.f32 %v1571_v53, %v1569_v52  ;;  %2630 = vst [vmem:[#allocation19_spill] sm:$0xff] %v1591_v47  ;;  %v1593_v53 = vld [vmem:[#allocation2 + $0x1f0] sm:$0xff]  ;;  %v1595_v52 = vld [vmem:[#allocation2 + $0x1f8] sm:$0xff] }
  0x3c   :  { %2631 = vst [vmem:[#allocation20_spill] sm:$0xff] %v1593_v53  ;;  %2632 = vst [vmem:[#allocation21_spill] sm:$0xff] %v1595_v52 }
  0x3e   :  { %186 = vadd.xlane.f32.xlu0 %v185_v3  ;;  %v1577_v3 = vld [vmem:[#allocation2 + $0x1c0] sm:$0xff] }
  0x3f   :  { %189 = vadd.xlane.f32.xlu1 %v188_v7  ;;  %2625 = vst [vmem:[#allocation14_spill] sm:$0xff] %v1577_v3  ;;  %v1579_v7 = vld [vmem:[#allocation2 + $0x1c8] sm:$0xff] }
  0x40   :  { %2626 = vst [vmem:[#allocation15_spill] sm:$0xff] %v1579_v7  ;;  %v209_v35 = vadd.f32 %v1579_v7, %v1577_v3  ;;  %v1603_v7 = vld [vmem:[#allocation2 + $0x208] sm:$0xff] }
  0x41   :  { %2634 = vst [vmem:[#allocation23_spill] sm:$0xff] %v1603_v7 }
  0x42   :  { %192 = vadd.xlane.f32.xlu0 %v191_v22  ;;  %v1581_v22 = vld [vmem:[#allocation2 + $0x1d0] sm:$0xff] }
  0x43   :  { %195 = vadd.xlane.f32.xlu1 %v194_v23  ;;  %2627 = vst [vmem:[#allocation16_spill] sm:$0xff] %v1581_v22  ;;  %v1583_v23 = vld [vmem:[#allocation2 + $0x1d8] sm:$0xff] }
  0x44   :  { %2628 = vst [vmem:[#allocation17_spill] sm:$0xff] %v1583_v23 }
  0x46   :  { %198 = vadd.xlane.f32.xlu0 %v197_v40  ;;  %v212_v40 = vadd.f32 %v1583_v23, %v1581_v22  ;;  %v1605_v23 = vld [vmem:[#allocation2 + $0x210] sm:$0xff]  ;;  %v1607_v22 = vld [vmem:[#allocation2 + $0x218] sm:$0xff] }
  0x47   :  { %201 = vadd.xlane.f32.xlu1 %v200_v41  ;;  %v1589_v41 = vld [vmem:[#allocation2 + $0x1e0] sm:$0xff]  ;;  %2635 = vst [vmem:[#allocation24_spill] sm:$0xff] %v1605_v23  ;;  %2636 = vst [vmem:[#allocation25_spill] sm:$0xff] %v1607_v22 }
  0x48   :  { %2629 = vst [vmem:[#allocation18_spill] sm:$0xff] %v1589_v41  ;;  %v215_v46 = vadd.f32 %v1591_v47, %v1589_v41  ;;  %v1615_v47 = vld [vmem:[#allocation2 + $0x228] sm:$0xff] }
  0x49   :  { %2638 = vst [vmem:[#allocation27_spill] sm:$0xff] %v1615_v47 }
  0x4a   :  { %204 = vadd.xlane.f32.xlu0 %v203_v58  ;;  %v218_v58 = vadd.f32 %v1595_v52, %v1593_v53  ;;  %v1617_v52 = vld [vmem:[#allocation2 + $0x230] sm:$0xff]  ;;  %v1619_v53 = vld [vmem:[#allocation2 + $0x238] sm:$0xff] }
  0x4b   :  { %207 = vadd.xlane.f32.xlu1 %v206_v59  ;;  %v1601_v59 = vld [vmem:[#allocation2 + $0x200] sm:$0xff]  ;;  %2639 = vst [vmem:[#allocation28_spill] sm:$0xff] %v1617_v52  ;;  %2640 = vst [vmem:[#allocation29_spill] sm:$0xff] %v1619_v53 }
  0x4c   :  { %2633 = vst [vmem:[#allocation22_spill] sm:$0xff] %v1601_v59  ;;  %v221_v3 = vadd.f32 %v1603_v7, %v1601_v59  ;;  %v1627_v7 = vld [vmem:[#allocation2 + $0x248] sm:$0xff] }
  0x4d   :  { %2642 = vst [vmem:[#allocation31_spill] sm:$0xff] %v1627_v7 }
  0x4e   :  { %210 = vadd.xlane.f32.xlu0 %v209_v35  ;;  %v224_v35 = vadd.f32 %v1607_v22, %v1605_v23  ;;  %v1629_v22 = vld [vmem:[#allocation2 + $0x250] sm:$0xff]  ;;  %v1631_v23 = vld [vmem:[#allocation2 + $0x258] sm:$0xff] }
  0x4f   :  { %213 = vadd.xlane.f32.xlu1 %v212_v40  ;;  %v1613_v40 = vld [vmem:[#allocation2 + $0x220] sm:$0xff]  ;;  %2643 = vst [vmem:[#allocation32_spill] sm:$0xff] %v1629_v22  ;;  %2644 = vst [vmem:[#allocation33_spill] sm:$0xff] %v1631_v23 }
  0x50   :  { %2637 = vst [vmem:[#allocation26_spill] sm:$0xff] %v1613_v40  ;;  %v227_v41 = vadd.f32 %v1615_v47, %v1613_v40  ;;  %v1639_v47 = vld [vmem:[#allocation2 + $0x268] sm:$0xff] }
  0x51   :  { %2646 = vst [vmem:[#allocation35_spill] sm:$0xff] %v1639_v47 }
  0x52   :  { %216 = vadd.xlane.f32.xlu0 %v215_v46  ;;  %v230_v46 = vadd.f32 %v1619_v53, %v1617_v52  ;;  %v1641_v53 = vld [vmem:[#allocation2 + $0x270] sm:$0xff]  ;;  %v1643_v52 = vld [vmem:[#allocation2 + $0x278] sm:$0xff] }
  0x53   :  { %219 = vadd.xlane.f32.xlu1 %v218_v58  ;;  %v1625_v58 = vld [vmem:[#allocation2 + $0x240] sm:$0xff]  ;;  %2647 = vst [vmem:[#allocation36_spill] sm:$0xff] %v1641_v53  ;;  %2648 = vst [vmem:[#allocation37_spill] sm:$0xff] %v1643_v52 }
  0x54   :  { %2641 = vst [vmem:[#allocation30_spill] sm:$0xff] %v1625_v58  ;;  %v233_v59 = vadd.f32 %v1627_v7, %v1625_v58  ;;  %v1651_v7 = vld [vmem:[#allocation2 + $0x288] sm:$0xff] }
  0x55   :  { %2650 = vst [vmem:[#allocation39_spill] sm:$0xff] %v1651_v7 }
  0x56   :  { %222 = vadd.xlane.f32.xlu0 %v221_v3  ;;  %v236_v3 = vadd.f32 %v1631_v23, %v1629_v22  ;;  %v1653_v23 = vld [vmem:[#allocation2 + $0x290] sm:$0xff]  ;;  %v1655_v22 = vld [vmem:[#allocation2 + $0x298] sm:$0xff] }
  0x57   :  { %225 = vadd.xlane.f32.xlu1 %v224_v35  ;;  %v1637_v35 = vld [vmem:[#allocation2 + $0x260] sm:$0xff]  ;;  %2651 = vst [vmem:[#allocation40_spill] sm:$0xff] %v1653_v23  ;;  %2652 = vst [vmem:[#allocation41_spill] sm:$0xff] %v1655_v22 }
  0x58   :  { %2645 = vst [vmem:[#allocation34_spill] sm:$0xff] %v1637_v35  ;;  %v239_v40 = vadd.f32 %v1639_v47, %v1637_v35  ;;  %v1663_v47 = vld [vmem:[#allocation2 + $0x2a8] sm:$0xff] }
  0x59   :  { %2654 = vst [vmem:[#allocation43_spill] sm:$0xff] %v1663_v47 }
  0x5a   :  { %228 = vadd.xlane.f32.xlu0 %v227_v41  ;;  %v242_v41 = vadd.f32 %v1643_v52, %v1641_v53  ;;  %v1665_v52 = vld [vmem:[#allocation2 + $0x2b0] sm:$0xff]  ;;  %v1667_v53 = vld [vmem:[#allocation2 + $0x2b8] sm:$0xff] }
  0x5b   :  { %231 = vadd.xlane.f32.xlu1 %v230_v46  ;;  %v1649_v46 = vld [vmem:[#allocation2 + $0x280] sm:$0xff]  ;;  %2655 = vst [vmem:[#allocation44_spill] sm:$0xff] %v1665_v52  ;;  %2656 = vst [vmem:[#allocation45_spill] sm:$0xff] %v1667_v53 }
  0x5c   :  { %2649 = vst [vmem:[#allocation38_spill] sm:$0xff] %v1649_v46  ;;  %v245_v58 = vadd.f32 %v1651_v7, %v1649_v46  ;;  %v1675_v7 = vld [vmem:[#allocation2 + $0x2c8] sm:$0xff] }
  0x5d   :  { %2658 = vst [vmem:[#allocation47_spill] sm:$0xff] %v1675_v7 }
  0x5e   :  { %234 = vadd.xlane.f32.xlu0 %v233_v59  ;;  %v248_v59 = vadd.f32 %v1655_v22, %v1653_v23  ;;  %v1677_v22 = vld [vmem:[#allocation2 + $0x2d0] sm:$0xff]  ;;  %v1679_v23 = vld [vmem:[#allocation2 + $0x2d8] sm:$0xff] }
  0x5f   :  { %237 = vadd.xlane.f32.xlu1 %v236_v3  ;;  %v1661_v3 = vld [vmem:[#allocation2 + $0x2a0] sm:$0xff]  ;;  %2659 = vst [vmem:[#allocation48_spill] sm:$0xff] %v1677_v22  ;;  %2660 = vst [vmem:[#allocation49_spill] sm:$0xff] %v1679_v23 }
  0x60   :  { %2653 = vst [vmem:[#allocation42_spill] sm:$0xff] %v1661_v3  ;;  %v251_v35 = vadd.f32 %v1663_v47, %v1661_v3  ;;  %v1687_v47 = vld [vmem:[#allocation2 + $0x2e8] sm:$0xff] }
  0x61   :  { %2661 = vst [vmem:[#allocation50_spill] sm:$0xff] %v1687_v47 }
  0x62   :  { %240 = vadd.xlane.f32.xlu0 %v239_v40  ;;  %v254_v40 = vadd.f32 %v1667_v53, %v1665_v52  ;;  %v1689_v53 = vld [vmem:[#allocation2 + $0x2f0] sm:$0xff]  ;;  %v1691_v52 = vld [vmem:[#allocation2 + $0x2f8] sm:$0xff] }
  0x63   :  { %243 = vadd.xlane.f32.xlu1 %v242_v41  ;;  %v1673_v41 = vld [vmem:[#allocation2 + $0x2c0] sm:$0xff]  ;;  %2662 = vst [vmem:[#allocation51_spill] sm:$0xff] %v1691_v52 }
  0x64   :  { %2657 = vst [vmem:[#allocation46_spill] sm:$0xff] %v1673_v41  ;;  %v257_v46 = vadd.f32 %v1675_v7, %v1673_v41 }
  0x66   :  { %246 = vadd.xlane.f32.xlu0 %v245_v58  ;;  %v260_v58 = vadd.f32 %v1679_v23, %v1677_v22 }
  0x67   :  { %249 = vadd.xlane.f32.xlu1 %v248_v59  ;;  %v1685_v59 = vld [vmem:[#allocation2 + $0x2e0] sm:$0xff] }
  0x68   :  { %v263_v3 = vadd.f32 %v1687_v47, %v1685_v59 }
  0x6a   :  { %252 = vadd.xlane.f32.xlu0 %v251_v35  ;;  %v266_v35 = vadd.f32 %v1691_v52, %v1689_v53 }
  0x6b   :  { %255 = vadd.xlane.f32.xlu1 %v254_v40 }
  0x6e   :  { %258 = vadd.xlane.f32.xlu0 %v257_v46 }
  0x6f   :  { %261 = vadd.xlane.f32.xlu1 %v260_v58 }
  0x72   :  { %264 = vadd.xlane.f32.xlu0 %v263_v3 }
  0x73   :  { %267 = vadd.xlane.f32.xlu1 %v266_v35 }
  0xa3   :  { %v127_v40 = vpop.xlane.xlu0 %126 }
  0xa4   :  { %v269_v23 = vmul.f32 0.00390625, %v127_v40  ;;  %v133_v22 = vpop.xlane.xlu1 %132 }
  0xa5   :  { %v271_v7 = vmul.f32 0.00390625, %v133_v22 }
  0xa6   :  { %v1698_v41 = vsub.f32 %v1409_v0, %v269_v23  ;;  %v1701_v34 = vsub.f32 %v1411_v1, %v269_v23 }
  0xa7   :  { %v1704_v46 = vsub.f32 %v1413_v2, %v271_v7  ;;  %v1707_v58 = vsub.f32 %v1417_v4, %v271_v7  ;;  %v130_v47 = vpop.xlane.xlu0 %129 }
  0xa8   :  { %2663 = vst [vmem:[#allocation52_spill] sm:$0xff] %v1698_v41  ;;  %2664 = vst [vmem:[#allocation53_spill] sm:$0xff] %v1701_v34  ;;  %v270_v52 = vmul.f32 0.00390625, %v130_v47  ;;  %v136_v3 = vpop.xlane.xlu1 %135  ;;  %v413_v35 = vmul.f32 %v1698_v41, %v1698_v41  ;;  %v414_v22 = vmul.f32 %v1701_v34, %v1701_v34 }
  0xa9   :  { %2665 = vst [vmem:[#allocation54_spill] sm:$0xff] %v1704_v46  ;;  %2666 = vst [vmem:[#allocation55_spill] sm:$0xff] %v1707_v58  ;;  %v272_v0 = vmul.f32 0.00390625, %v136_v3  ;;  %v417_v1 = vmul.f32 %v1704_v46, %v1704_v46  ;;  %v418_v2 = vmul.f32 %v1707_v58, %v1707_v58 }
  0xaa   :  { %v1718_v23 = vsub.f32 %v1419_v5, %v270_v52  ;;  %v1721_v4 = vsub.f32 %v1421_v6, %v270_v52  ;;  %v509_v47 = vadd.f32 %v414_v22, %v413_v35 }
  0xab   :  { %v1724_v7 = vsub.f32 %v1425_v8, %v272_v0  ;;  %v1727_v40 = vsub.f32 %v1427_v9, %v272_v0  ;;  %v139_v3 = vpop.xlane.xlu0 %138  ;;  %v515_v41 = vadd.f32 %v418_v2, %v417_v1 }
  0xac   :  { %v273_v34 = vmul.f32 0.00390625, %v139_v3  ;;  %510 = vadd.xlane.f32.xlu0 %v509_v47  ;;  %v142_v46 = vpop.xlane.xlu1 %141  ;;  %v415_v58 = vmul.f32 %v1718_v23, %v1718_v23  ;;  %v416_v5 = vmul.f32 %v1721_v4, %v1721_v4 }
  0xad   :  { %v274_v6 = vmul.f32 0.00390625, %v142_v46  ;;  %v419_v52 = vmul.f32 %v1724_v7, %v1724_v7  ;;  %v420_v8 = vmul.f32 %v1727_v40, %v1727_v40 }
  0xae   :  { %v1738_v9 = vsub.f32 %v1433_v12, %v273_v34  ;;  %v1741_v35 = vsub.f32 %v1435_v13, %v273_v34  ;;  %v512_v22 = vadd.f32 %v416_v5, %v415_v58 }
  0xaf   :  { %v1744_v0 = vsub.f32 %v1437_v14, %v274_v6  ;;  %v1747_v1 = vsub.f32 %v1439_v15, %v274_v6  ;;  %v145_v46 = vpop.xlane.xlu0 %144  ;;  %v518_v3 = vadd.f32 %v420_v8, %v419_v52 }
  0xb0   :  { %v275_v2 = vmul.f32 0.00390625, %v145_v46  ;;  %516 = vadd.xlane.f32.xlu0 %v515_v41  ;;  %513 = vadd.xlane.f32.xlu1 %v512_v22  ;;  %v148_v47 = vpop.xlane.xlu1 %147  ;;  %v421_v12 = vmul.f32 %v1738_v9, %v1738_v9  ;;  %v422_v13 = vmul.f32 %v1741_v35, %v1741_v35 }
  0xb1   :  { %v276_v34 = vmul.f32 0.00390625, %v148_v47  ;;  %v423_v14 = vmul.f32 %v1744_v0, %v1744_v0  ;;  %v424_v15 = vmul.f32 %v1747_v1, %v1747_v1 }
  0xb2   :  { %v1758_v58 = vsub.f32 %v1445_v18, %v275_v2  ;;  %v1761_v41 = vsub.f32 %v1447_v19, %v275_v2  ;;  %v521_v5 = vadd.f32 %v422_v13, %v421_v12 }
  0xb3   :  { %v1764_v6 = vsub.f32 %v1449_v20, %v276_v34  ;;  %v1767_v52 = vsub.f32 %v1451_v21, %v276_v34  ;;  %v151_v8 = vpop.xlane.xlu0 %150  ;;  %v524_v47 = vadd.f32 %v424_v15, %v423_v14 }
  0xb4   :  { %v277_v22 = vmul.f32 0.00390625, %v151_v8  ;;  %519 = vadd.xlane.f32.xlu1 %v518_v3  ;;  %522 = vadd.xlane.f32.xlu0 %v521_v5  ;;  %v154_v46 = vpop.xlane.xlu1 %153  ;;  %v425_v18 = vmul.f32 %v1758_v58, %v1758_v58  ;;  %v426_v19 = vmul.f32 %v1761_v41, %v1761_v41 }
  0xb5   :  { %v278_v2 = vmul.f32 0.00390625, %v154_v46  ;;  %v427_v20 = vmul.f32 %v1764_v6, %v1764_v6  ;;  %v428_v21 = vmul.f32 %v1767_v52, %v1767_v52 }
  0xb6   :  { %v1778_v12 = vsub.f32 %v1457_v24, %v277_v22  ;;  %v1781_v3 = vsub.f32 %v1459_v25, %v277_v22  ;;  %v527_v13 = vadd.f32 %v426_v19, %v425_v18 }
  0xb7   :  { %v1784_v34 = vsub.f32 %v1461_v26, %v278_v2  ;;  %v1787_v14 = vsub.f32 %v1463_v27, %v278_v2  ;;  %v157_v15 = vpop.xlane.xlu0 %156  ;;  %v530_v46 = vadd.f32 %v428_v21, %v427_v20 }
  0xb8   :  { %v279_v5 = vmul.f32 0.00390625, %v157_v15  ;;  %525 = vadd.xlane.f32.xlu1 %v524_v47  ;;  %528 = vadd.xlane.f32.xlu0 %v527_v13  ;;  %v160_v8 = vpop.xlane.xlu1 %159  ;;  %v429_v24 = vmul.f32 %v1778_v12, %v1778_v12  ;;  %v430_v25 = vmul.f32 %v1781_v3, %v1781_v3 }
  0xb9   :  { %v280_v22 = vmul.f32 0.00390625, %v160_v8  ;;  %v431_v26 = vmul.f32 %v1784_v34, %v1784_v34  ;;  %v432_v27 = vmul.f32 %v1787_v14, %v1787_v14 }
  0xba   :  { %v1798_v18 = vsub.f32 %v1469_v30, %v279_v5  ;;  %v1801_v47 = vsub.f32 %v1471_v31, %v279_v5  ;;  %v533_v19 = vadd.f32 %v430_v25, %v429_v24 }
  0xbb   :  { %v1804_v2 = vsub.f32 %v1473_v32, %v280_v22  ;;  %v1807_v20 = vsub.f32 %v1475_v33, %v280_v22  ;;  %v163_v21 = vpop.xlane.xlu0 %162  ;;  %v536_v8 = vadd.f32 %v432_v27, %v431_v26 }
  0xbc   :  { %v281_v13 = vmul.f32 0.00390625, %v163_v21  ;;  %531 = vadd.xlane.f32.xlu1 %v530_v46  ;;  %534 = vadd.xlane.f32.xlu0 %v533_v19  ;;  %v166_v15 = vpop.xlane.xlu1 %165  ;;  %v433_v30 = vmul.f32 %v1798_v18, %v1798_v18  ;;  %v434_v31 = vmul.f32 %v1801_v47, %v1801_v47 }
  0xbd   :  { %v282_v5 = vmul.f32 0.00390625, %v166_v15  ;;  %v435_v32 = vmul.f32 %v1804_v2, %v1804_v2  ;;  %v436_v33 = vmul.f32 %v1807_v20, %v1807_v20 }
  0xbe   :  { %v1818_v24 = vsub.f32 %v1481_v36, %v281_v13  ;;  %v1821_v46 = vsub.f32 %v1483_v37, %v281_v13  ;;  %v539_v25 = vadd.f32 %v434_v31, %v433_v30 }
  0xbf   :  { %v1824_v22 = vsub.f32 %v1485_v38, %v282_v5  ;;  %v1827_v26 = vsub.f32 %v1487_v39, %v282_v5  ;;  %v169_v27 = vpop.xlane.xlu0 %168  ;;  %v542_v15 = vadd.f32 %v436_v33, %v435_v32 }
  0xc0   :  { %v283_v19 = vmul.f32 0.00390625, %v169_v27  ;;  %537 = vadd.xlane.f32.xlu1 %v536_v8  ;;  %540 = vadd.xlane.f32.xlu0 %v539_v25  ;;  %v172_v21 = vpop.xlane.xlu1 %171  ;;  %v437_v36 = vmul.f32 %v1818_v24, %v1818_v24  ;;  %v438_v37 = vmul.f32 %v1821_v46, %v1821_v46 }
  0xc1   :  { %v284_v13 = vmul.f32 0.00390625, %v172_v21  ;;  %v439_v38 = vmul.f32 %v1824_v22, %v1824_v22  ;;  %v440_v39 = vmul.f32 %v1827_v26, %v1827_v26 }
  0xc2   :  { %v1838_v30 = vsub.f32 %v1493_v42, %v283_v19  ;;  %v1841_v8 = vsub.f32 %v1495_v43, %v283_v19  ;;  %v545_v31 = vadd.f32 %v438_v37, %v437_v36 }
  0xc3   :  { %v1844_v5 = vsub.f32 %v1497_v44, %v284_v13  ;;  %v1847_v32 = vsub.f32 %v1499_v45, %v284_v13  ;;  %v175_v33 = vpop.xlane.xlu0 %174  ;;  %v548_v21 = vadd.f32 %v440_v39, %v439_v38 }
  0xc4   :  { %v285_v25 = vmul.f32 0.00390625, %v175_v33  ;;  %543 = vadd.xlane.f32.xlu1 %v542_v15  ;;  %546 = vadd.xlane.f32.xlu0 %v545_v31  ;;  %v178_v27 = vpop.xlane.xlu1 %177  ;;  %v441_v42 = vmul.f32 %v1838_v30, %v1838_v30  ;;  %v442_v43 = vmul.f32 %v1841_v8, %v1841_v8 }
  0xc5   :  { %v286_v19 = vmul.f32 0.00390625, %v178_v27  ;;  %v443_v44 = vmul.f32 %v1844_v5, %v1844_v5  ;;  %v444_v45 = vmul.f32 %v1847_v32, %v1847_v32 }
  0xc6   :  { %v1858_v36 = vsub.f32 %v1505_v48, %v285_v25  ;;  %v1861_v15 = vsub.f32 %v1507_v49, %v285_v25  ;;  %v551_v37 = vadd.f32 %v442_v43, %v441_v42 }
  0xc7   :  { %v1864_v13 = vsub.f32 %v1509_v50, %v286_v19  ;;  %v1867_v38 = vsub.f32 %v1511_v51, %v286_v19  ;;  %v181_v39 = vpop.xlane.xlu0 %180  ;;  %v554_v27 = vadd.f32 %v444_v45, %v443_v44 }
  0xc8   :  { %v287_v31 = vmul.f32 0.00390625, %v181_v39  ;;  %549 = vadd.xlane.f32.xlu1 %v548_v21  ;;  %552 = vadd.xlane.f32.xlu0 %v551_v37  ;;  %v184_v33 = vpop.xlane.xlu1 %183  ;;  %v445_v48 = vmul.f32 %v1858_v36, %v1858_v36  ;;  %v446_v49 = vmul.f32 %v1861_v15, %v1861_v15 }
  0xc9   :  { %v288_v25 = vmul.f32 0.00390625, %v184_v33  ;;  %v447_v50 = vmul.f32 %v1864_v13, %v1864_v13  ;;  %v448_v51 = vmul.f32 %v1867_v38, %v1867_v38 }
  0xca   :  { %v1878_v42 = vsub.f32 %v1517_v54, %v287_v31  ;;  %v1881_v21 = vsub.f32 %v1519_v55, %v287_v31  ;;  %v557_v43 = vadd.f32 %v446_v49, %v445_v48 }
  0xcb   :  { %v1884_v19 = vsub.f32 %v1521_v56, %v288_v25  ;;  %v1887_v44 = vsub.f32 %v1523_v57, %v288_v25  ;;  %v187_v45 = vpop.xlane.xlu0 %186  ;;  %v560_v33 = vadd.f32 %v448_v51, %v447_v50 }
  0xcc   :  { %v289_v37 = vmul.f32 0.00390625, %v187_v45  ;;  %555 = vadd.xlane.f32.xlu1 %v554_v27  ;;  %558 = vadd.xlane.f32.xlu0 %v557_v43  ;;  %v190_v39 = vpop.xlane.xlu1 %189  ;;  %v449_v54 = vmul.f32 %v1878_v42, %v1878_v42  ;;  %v450_v55 = vmul.f32 %v1881_v21, %v1881_v21 }
  0xcd   :  { %v290_v31 = vmul.f32 0.00390625, %v190_v39  ;;  %v451_v56 = vmul.f32 %v1884_v19, %v1884_v19  ;;  %v452_v57 = vmul.f32 %v1887_v44, %v1887_v44 }
  0xce   :  { %v1898_v48 = vsub.f32 %v1529_v60, %v289_v37  ;;  %v1901_v27 = vsub.f32 %v1531_v61, %v289_v37  ;;  %v563_v49 = vadd.f32 %v450_v55, %v449_v54 }
  0xcf   :  { %v1904_v25 = vsub.f32 %v1533_v62, %v290_v31  ;;  %v1907_v50 = vsub.f32 %v1535_v63, %v290_v31  ;;  %v193_v51 = vpop.xlane.xlu0 %192  ;;  %v566_v39 = vadd.f32 %v452_v57, %v451_v56 }
  0xd0   :  { %v291_v43 = vmul.f32 0.00390625, %v193_v51  ;;  %561 = vadd.xlane.f32.xlu1 %v560_v33  ;;  %564 = vadd.xlane.f32.xlu0 %v563_v49  ;;  %v196_v45 = vpop.xlane.xlu1 %195  ;;  %v453_v60 = vmul.f32 %v1898_v48, %v1898_v48  ;;  %v454_v61 = vmul.f32 %v1901_v27, %v1901_v27 }
  0xd1   :  { %v292_v37 = vmul.f32 0.00390625, %v196_v45  ;;  %v455_v62 = vmul.f32 %v1904_v25, %v1904_v25  ;;  %v456_v63 = vmul.f32 %v1907_v50, %v1907_v50 }
  0xd2   :  { %v1918_v54 = vsub.f32 %v1541_v10, %v291_v43  ;;  %v1921_v33 = vsub.f32 %v1543_v11, %v291_v43  ;;  %v569_v55 = vadd.f32 %v454_v61, %v453_v60 }
  0xd3   :  { %v1924_v31 = vsub.f32 %v1545_v16, %v292_v37  ;;  %v1927_v56 = vsub.f32 %v1547_v17, %v292_v37  ;;  %v199_v57 = vpop.xlane.xlu0 %198  ;;  %v572_v45 = vadd.f32 %v456_v63, %v455_v62  ;;  %v2673_v37 = vld [vmem:[#allocation8_spill] sm:$0xff]  ;;  %v2675_v63 = vld [vmem:[#allocation9_spill] sm:$0xff] }
  0xd4   :  { %2667 = vst [vmem:[#allocation56_spill] sm:$0xff] %v1918_v54  ;;  %2668 = vst [vmem:[#allocation57_spill] sm:$0xff] %v1921_v33  ;;  %v293_v49 = vmul.f32 0.00390625, %v199_v57  ;;  %567 = vadd.xlane.f32.xlu1 %v566_v39  ;;  %570 = vadd.xlane.f32.xlu0 %v569_v55  ;;  %v202_v51 = vpop.xlane.xlu1 %201  ;;  %v457_v10 = vmul.f32 %v1918_v54, %v1918_v54  ;;  %v458_v11 = vmul.f32 %v1921_v33, %v1921_v33 }
  0xd5   :  { %2669 = vst [vmem:[#allocation58_spill] sm:$0xff] %v1924_v31  ;;  %2670 = vst [vmem:[#allocation59_spill] sm:$0xff] %v1927_v56  ;;  %v294_v43 = vmul.f32 0.00390625, %v202_v51  ;;  %v459_v16 = vmul.f32 %v1924_v31, %v1924_v31  ;;  %v460_v17 = vmul.f32 %v1927_v56, %v1927_v56 }
  0xd6   :  { %v1938_v60 = vsub.f32 %v1553_v28, %v293_v49  ;;  %v1941_v39 = vsub.f32 %v1555_v29, %v293_v49  ;;  %v575_v61 = vadd.f32 %v458_v11, %v457_v10 }
  0xd7   :  { %v1944_v62 = vsub.f32 %v2673_v37, %v294_v43  ;;  %v1947_v55 = vsub.f32 %v2675_v63, %v294_v43  ;;  %v205_v57 = vpop.xlane.xlu0 %204  ;;  %v578_v33 = vadd.f32 %v460_v17, %v459_v16  ;;  %v2677_v43 = vld [vmem:[#allocation10_spill] sm:$0xff]  ;;  %v2681_v17 = vld [vmem:[#allocation12_spill] sm:$0xff] }
  0xd8   :  { %2671 = vst [vmem:[#allocation60_spill] sm:$0xff] %v1938_v60  ;;  %2672 = vst [vmem:[#allocation61_spill] sm:$0xff] %v1941_v39  ;;  %v295_v51 = vmul.f32 0.00390625, %v205_v57  ;;  %573 = vadd.xlane.f32.xlu1 %v572_v45  ;;  %576 = vadd.xlane.f32.xlu0 %v575_v61  ;;  %v208_v31 = vpop.xlane.xlu1 %207  ;;  %v461_v28 = vmul.f32 %v1938_v60, %v1938_v60  ;;  %v462_v29 = vmul.f32 %v1941_v39, %v1941_v39  ;;  %v2679_v45 = vld [vmem:[#allocation11_spill] sm:$0xff]  ;;  %v2683_v57 = vld [vmem:[#allocation13_spill] sm:$0xff] }
  0xd9   :  { %2674 = vst [vmem:[#allocation8_spill] sm:$0xff] %v1944_v62  ;;  %2676 = vst [vmem:[#allocation9_spill] sm:$0xff] %v1947_v55  ;;  %v296_v49 = vmul.f32 0.00390625, %v208_v31  ;;  %v463_v10 = vmul.f32 %v1944_v62, %v1944_v62  ;;  %v464_v11 = vmul.f32 %v1947_v55, %v1947_v55 }
  0xda   :  { %v1958_v37 = vsub.f32 %v2677_v43, %v295_v51  ;;  %v1961_v61 = vsub.f32 %v2679_v45, %v295_v51  ;;  %v581_v16 = vadd.f32 %v462_v29, %v461_v28 }
  0xdb   :  { %v1964_v63 = vsub.f32 %v2681_v17, %v296_v49  ;;  %v1967_v60 = vsub.f32 %v2683_v57, %v296_v49  ;;  %v211_v31 = vpop.xlane.xlu0 %210  ;;  %v584_v56 = vadd.f32 %v464_v11, %v463_v10  ;;  %v2685_v49 = vld [vmem:[#allocation14_spill] sm:$0xff]  ;;  %v2689_v11 = vld [vmem:[#allocation16_spill] sm:$0xff] }
  0xdc   :  { %2678 = vst [vmem:[#allocation10_spill] sm:$0xff] %v1958_v37  ;;  %2680 = vst [vmem:[#allocation11_spill] sm:$0xff] %v1961_v61  ;;  %v297_v39 = vmul.f32 0.00390625, %v211_v31  ;;  %579 = vadd.xlane.f32.xlu1 %v578_v33  ;;  %582 = vadd.xlane.f32.xlu0 %v581_v16  ;;  %v214_v62 = vpop.xlane.xlu1 %213  ;;  %v465_v43 = vmul.f32 %v1958_v37, %v1958_v37  ;;  %v466_v51 = vmul.f32 %v1961_v61, %v1961_v61  ;;  %v2687_v33 = vld [vmem:[#allocation15_spill] sm:$0xff]  ;;  %v2691_v31 = vld [vmem:[#allocation17_spill] sm:$0xff] }
  0xdd   :  { %2682 = vst [vmem:[#allocation12_spill] sm:$0xff] %v1964_v63  ;;  %2684 = vst [vmem:[#allocation13_spill] sm:$0xff] %v1967_v60  ;;  %v298_v45 = vmul.f32 0.00390625, %v214_v62  ;;  %v467_v28 = vmul.f32 %v1964_v63, %v1964_v63  ;;  %v468_v29 = vmul.f32 %v1967_v60, %v1967_v60 }
  0xde   :  { %v1978_v17 = vsub.f32 %v2685_v49, %v297_v39  ;;  %v1981_v16 = vsub.f32 %v2687_v33, %v297_v39  ;;  %v587_v10 = vadd.f32 %v466_v51, %v465_v43 }
  0xdf   :  { %v1984_v57 = vsub.f32 %v2689_v11, %v298_v45  ;;  %v1987_v37 = vsub.f32 %v2691_v31, %v298_v45  ;;  %v217_v62 = vpop.xlane.xlu0 %216  ;;  %v590_v55 = vadd.f32 %v468_v29, %v467_v28  ;;  %v2693_v45 = vld [vmem:[#allocation18_spill] sm:$0xff]  ;;  %v2697_v29 = vld [vmem:[#allocation20_spill] sm:$0xff] }
  0xe0   :  { %2686 = vst [vmem:[#allocation14_spill] sm:$0xff] %v1978_v17  ;;  %2688 = vst [vmem:[#allocation15_spill] sm:$0xff] %v1981_v16  ;;  %v299_v61 = vmul.f32 0.00390625, %v217_v62  ;;  %585 = vadd.xlane.f32.xlu1 %v584_v56  ;;  %588 = vadd.xlane.f32.xlu0 %v587_v10  ;;  %v220_v63 = vpop.xlane.xlu1 %219  ;;  %v469_v49 = vmul.f32 %v1978_v17, %v1978_v17  ;;  %v470_v39 = vmul.f32 %v1981_v16, %v1981_v16  ;;  %v2695_v56 = vld [vmem:[#allocation19_spill] sm:$0xff]  ;;  %v2699_v62 = vld [vmem:[#allocation21_spill] sm:$0xff] }
  0xe1   :  { %2690 = vst [vmem:[#allocation16_spill] sm:$0xff] %v1984_v57  ;;  %2692 = vst [vmem:[#allocation17_spill] sm:$0xff] %v1987_v37  ;;  %v300_v33 = vmul.f32 0.00390625, %v220_v63  ;;  %v471_v43 = vmul.f32 %v1984_v57, %v1984_v57  ;;  %v472_v51 = vmul.f32 %v1987_v37, %v1987_v37 }
  0xe2   :  { %v1998_v11 = vsub.f32 %v2693_v45, %v299_v61  ;;  %v2001_v10 = vsub.f32 %v2695_v56, %v299_v61  ;;  %v593_v28 = vadd.f32 %v470_v39, %v469_v49 }
  0xe3   :  { %v2004_v31 = vsub.f32 %v2697_v29, %v300_v33  ;;  %v2007_v17 = vsub.f32 %v2699_v62, %v300_v33  ;;  %v223_v63 = vpop.xlane.xlu0 %222  ;;  %v596_v60 = vadd.f32 %v472_v51, %v471_v43  ;;  %v2701_v33 = vld [vmem:[#allocation22_spill] sm:$0xff]  ;;  %v2705_v51 = vld [vmem:[#allocation24_spill] sm:$0xff] }
  0xe4   :  { %2694 = vst [vmem:[#allocation18_spill] sm:$0xff] %v1998_v11  ;;  %2696 = vst [vmem:[#allocation19_spill] sm:$0xff] %v2001_v10  ;;  %v301_v16 = vmul.f32 0.00390625, %v223_v63  ;;  %591 = vadd.xlane.f32.xlu1 %v590_v55  ;;  %594 = vadd.xlane.f32.xlu0 %v593_v28  ;;  %v226_v57 = vpop.xlane.xlu1 %225  ;;  %v473_v45 = vmul.f32 %v1998_v11, %v1998_v11  ;;  %v474_v61 = vmul.f32 %v2001_v10, %v2001_v10  ;;  %v2703_v55 = vld [vmem:[#allocation23_spill] sm:$0xff]  ;;  %v2707_v63 = vld [vmem:[#allocation25_spill] sm:$0xff] }
  0xe5   :  { %2698 = vst [vmem:[#allocation20_spill] sm:$0xff] %v2004_v31  ;;  %2700 = vst [vmem:[#allocation21_spill] sm:$0xff] %v2007_v17  ;;  %v302_v56 = vmul.f32 0.00390625, %v226_v57  ;;  %v475_v49 = vmul.f32 %v2004_v31, %v2004_v31  ;;  %v476_v39 = vmul.f32 %v2007_v17, %v2007_v17 }
  0xe6   :  { %v2018_v29 = vsub.f32 %v2701_v33, %v301_v16  ;;  %v2021_v28 = vsub.f32 %v2703_v55, %v301_v16  ;;  %v599_v43 = vadd.f32 %v474_v61, %v473_v45 }
  0xe7   :  { %v2024_v62 = vsub.f32 %v2705_v51, %v302_v56  ;;  %v2027_v11 = vsub.f32 %v2707_v63, %v302_v56  ;;  %v229_v57 = vpop.xlane.xlu0 %228  ;;  %v602_v37 = vadd.f32 %v476_v39, %v475_v49  ;;  %v2709_v56 = vld [vmem:[#allocation26_spill] sm:$0xff]  ;;  %v2713_v39 = vld [vmem:[#allocation28_spill] sm:$0xff] }
  0xe8   :  { %2702 = vst [vmem:[#allocation22_spill] sm:$0xff] %v2018_v29  ;;  %2704 = vst [vmem:[#allocation23_spill] sm:$0xff] %v2021_v28  ;;  %v303_v10 = vmul.f32 0.00390625, %v229_v57  ;;  %597 = vadd.xlane.f32.xlu1 %v596_v60  ;;  %600 = vadd.xlane.f32.xlu0 %v599_v43  ;;  %v232_v31 = vpop.xlane.xlu1 %231  ;;  %v477_v33 = vmul.f32 %v2018_v29, %v2018_v29  ;;  %v478_v16 = vmul.f32 %v2021_v28, %v2021_v28  ;;  %v2711_v60 = vld [vmem:[#allocation27_spill] sm:$0xff]  ;;  %v2715_v57 = vld [vmem:[#allocation29_spill] sm:$0xff] }
  0xe9   :  { %2706 = vst [vmem:[#allocation24_spill] sm:$0xff] %v2024_v62  ;;  %2708 = vst [vmem:[#allocation25_spill] sm:$0xff] %v2027_v11  ;;  %v304_v55 = vmul.f32 0.00390625, %v232_v31  ;;  %v479_v45 = vmul.f32 %v2024_v62, %v2024_v62  ;;  %v480_v61 = vmul.f32 %v2027_v11, %v2027_v11 }
  0xea   :  { %v2038_v51 = vsub.f32 %v2709_v56, %v303_v10  ;;  %v2041_v43 = vsub.f32 %v2711_v60, %v303_v10  ;;  %v605_v49 = vadd.f32 %v478_v16, %v477_v33 }
  0xeb   :  { %v2044_v63 = vsub.f32 %v2713_v39, %v304_v55  ;;  %v2047_v29 = vsub.f32 %v2715_v57, %v304_v55  ;;  %v235_v31 = vpop.xlane.xlu0 %234  ;;  %v608_v17 = vadd.f32 %v480_v61, %v479_v45  ;;  %v2717_v55 = vld [vmem:[#allocation30_spill] sm:$0xff]  ;;  %v2721_v61 = vld [vmem:[#allocation32_spill] sm:$0xff] }
  0xec   :  { %2710 = vst [vmem:[#allocation26_spill] sm:$0xff] %v2038_v51  ;;  %2712 = vst [vmem:[#allocation27_spill] sm:$0xff] %v2041_v43  ;;  %v305_v28 = vmul.f32 0.00390625, %v235_v31  ;;  %603 = vadd.xlane.f32.xlu1 %v602_v37  ;;  %606 = vadd.xlane.f32.xlu0 %v605_v49  ;;  %v238_v62 = vpop.xlane.xlu1 %237  ;;  %v481_v56 = vmul.f32 %v2038_v51, %v2038_v51  ;;  %v482_v10 = vmul.f32 %v2041_v43, %v2041_v43  ;;  %v2719_v37 = vld [vmem:[#allocation31_spill] sm:$0xff]  ;;  %v2723_v31 = vld [vmem:[#allocation33_spill] sm:$0xff] }
  0xed   :  { %2714 = vst [vmem:[#allocation28_spill] sm:$0xff] %v2044_v63  ;;  %2716 = vst [vmem:[#allocation29_spill] sm:$0xff] %v2047_v29  ;;  %v306_v60 = vmul.f32 0.00390625, %v238_v62  ;;  %v483_v33 = vmul.f32 %v2044_v63, %v2044_v63  ;;  %v484_v16 = vmul.f32 %v2047_v29, %v2047_v29 }
  0xee   :  { %v2058_v39 = vsub.f32 %v2717_v55, %v305_v28  ;;  %v2061_v49 = vsub.f32 %v2719_v37, %v305_v28  ;;  %v611_v45 = vadd.f32 %v482_v10, %v481_v56 }
  0xef   :  { %v2064_v57 = vsub.f32 %v2721_v61, %v306_v60  ;;  %v2067_v51 = vsub.f32 %v2723_v31, %v306_v60  ;;  %v241_v62 = vpop.xlane.xlu0 %240  ;;  %v614_v11 = vadd.f32 %v484_v16, %v483_v33  ;;  %v2725_v60 = vld [vmem:[#allocation34_spill] sm:$0xff]  ;;  %v2729_v16 = vld [vmem:[#allocation36_spill] sm:$0xff] }
  0xf0   :  { %2718 = vst [vmem:[#allocation30_spill] sm:$0xff] %v2058_v39  ;;  %2720 = vst [vmem:[#allocation31_spill] sm:$0xff] %v2061_v49  ;;  %v307_v43 = vmul.f32 0.00390625, %v241_v62  ;;  %609 = vadd.xlane.f32.xlu1 %v608_v17  ;;  %612 = vadd.xlane.f32.xlu0 %v611_v45  ;;  %v244_v63 = vpop.xlane.xlu1 %243  ;;  %v485_v55 = vmul.f32 %v2058_v39, %v2058_v39  ;;  %v486_v28 = vmul.f32 %v2061_v49, %v2061_v49  ;;  %v2727_v17 = vld [vmem:[#allocation35_spill] sm:$0xff]  ;;  %v2731_v62 = vld [vmem:[#allocation37_spill] sm:$0xff] }
  0xf1   :  { %2722 = vst [vmem:[#allocation32_spill] sm:$0xff] %v2064_v57  ;;  %2724 = vst [vmem:[#allocation33_spill] sm:$0xff] %v2067_v51  ;;  %v308_v37 = vmul.f32 0.00390625, %v244_v63  ;;  %v487_v56 = vmul.f32 %v2064_v57, %v2064_v57  ;;  %v488_v10 = vmul.f32 %v2067_v51, %v2067_v51 }
  0xf2   :  { %v2078_v61 = vsub.f32 %v2725_v60, %v307_v43  ;;  %v2081_v45 = vsub.f32 %v2727_v17, %v307_v43  ;;  %v617_v33 = vadd.f32 %v486_v28, %v485_v55 }
  0xf3   :  { %v2084_v31 = vsub.f32 %v2729_v16, %v308_v37  ;;  %v2087_v39 = vsub.f32 %v2731_v62, %v308_v37  ;;  %v247_v63 = vpop.xlane.xlu0 %246  ;;  %v620_v29 = vadd.f32 %v488_v10, %v487_v56  ;;  %v2733_v37 = vld [vmem:[#allocation38_spill] sm:$0xff]  ;;  %v2737_v10 = vld [vmem:[#allocation40_spill] sm:$0xff] }
  0xf4   :  { %2726 = vst [vmem:[#allocation34_spill] sm:$0xff] %v2078_v61  ;;  %2728 = vst [vmem:[#allocation35_spill] sm:$0xff] %v2081_v45  ;;  %v309_v49 = vmul.f32 0.00390625, %v247_v63  ;;  %615 = vadd.xlane.f32.xlu1 %v614_v11  ;;  %618 = vadd.xlane.f32.xlu0 %v617_v33  ;;  %v250_v57 = vpop.xlane.xlu1 %249  ;;  %v489_v60 = vmul.f32 %v2078_v61, %v2078_v61  ;;  %v490_v43 = vmul.f32 %v2081_v45, %v2081_v45  ;;  %v2735_v11 = vld [vmem:[#allocation39_spill] sm:$0xff]  ;;  %v2739_v63 = vld [vmem:[#allocation41_spill] sm:$0xff] }
  0xf5   :  { %2730 = vst [vmem:[#allocation36_spill] sm:$0xff] %v2084_v31  ;;  %2732 = vst [vmem:[#allocation37_spill] sm:$0xff] %v2087_v39  ;;  %v310_v17 = vmul.f32 0.00390625, %v250_v57  ;;  %v491_v55 = vmul.f32 %v2084_v31, %v2084_v31  ;;  %v492_v28 = vmul.f32 %v2087_v39, %v2087_v39 }
  0xf6   :  { %v2098_v16 = vsub.f32 %v2733_v37, %v309_v49  ;;  %v2101_v33 = vsub.f32 %v2735_v11, %v309_v49  ;;  %v623_v56 = vadd.f32 %v490_v43, %v489_v60 }
  0xf7   :  { %v2104_v62 = vsub.f32 %v2737_v10, %v310_v17  ;;  %v2107_v61 = vsub.f32 %v2739_v63, %v310_v17  ;;  %v253_v57 = vpop.xlane.xlu0 %252  ;;  %v626_v51 = vadd.f32 %v492_v28, %v491_v55  ;;  %v2741_v17 = vld [vmem:[#allocation42_spill] sm:$0xff]  ;;  %v2745_v28 = vld [vmem:[#allocation44_spill] sm:$0xff] }
  0xf8   :  { %2734 = vst [vmem:[#allocation38_spill] sm:$0xff] %v2098_v16  ;;  %2736 = vst [vmem:[#allocation39_spill] sm:$0xff] %v2101_v33  ;;  %v311_v45 = vmul.f32 0.00390625, %v253_v57  ;;  %621 = vadd.xlane.f32.xlu1 %v620_v29  ;;  %624 = vadd.xlane.f32.xlu0 %v623_v56  ;;  %v256_v31 = vpop.xlane.xlu1 %255  ;;  %v493_v37 = vmul.f32 %v2098_v16, %v2098_v16  ;;  %v494_v49 = vmul.f32 %v2101_v33, %v2101_v33  ;;  %v2743_v29 = vld [vmem:[#allocation43_spill] sm:$0xff]  ;;  %v2747_v57 = vld [vmem:[#allocation45_spill] sm:$0xff] }
  0xf9   :  { %2738 = vst [vmem:[#allocation40_spill] sm:$0xff] %v2104_v62  ;;  %2740 = vst [vmem:[#allocation41_spill] sm:$0xff] %v2107_v61  ;;  %v312_v11 = vmul.f32 0.00390625, %v256_v31  ;;  %v495_v60 = vmul.f32 %v2104_v62, %v2104_v62  ;;  %v496_v43 = vmul.f32 %v2107_v61, %v2107_v61 }
  0xfa   :  { %v2118_v10 = vsub.f32 %v2741_v17, %v311_v45  ;;  %v2121_v56 = vsub.f32 %v2743_v29, %v311_v45  ;;  %v629_v55 = vadd.f32 %v494_v49, %v493_v37 }
  0xfb   :  { %v2124_v63 = vsub.f32 %v2745_v28, %v312_v11  ;;  %v2127_v16 = vsub.f32 %v2747_v57, %v312_v11  ;;  %v259_v31 = vpop.xlane.xlu0 %258  ;;  %v632_v39 = vadd.f32 %v496_v43, %v495_v60  ;;  %v2749_v11 = vld [vmem:[#allocation46_spill] sm:$0xff]  ;;  %v2753_v43 = vld [vmem:[#allocation48_spill] sm:$0xff] }
  0xfc   :  { %2742 = vst [vmem:[#allocation42_spill] sm:$0xff] %v2118_v10  ;;  %2744 = vst [vmem:[#allocation43_spill] sm:$0xff] %v2121_v56  ;;  %v313_v33 = vmul.f32 0.00390625, %v259_v31  ;;  %627 = vadd.xlane.f32.xlu1 %v626_v51  ;;  %630 = vadd.xlane.f32.xlu0 %v629_v55  ;;  %v262_v62 = vpop.xlane.xlu1 %261  ;;  %v497_v17 = vmul.f32 %v2118_v10, %v2118_v10  ;;  %v498_v45 = vmul.f32 %v2121_v56, %v2121_v56  ;;  %v2751_v51 = vld [vmem:[#allocation47_spill] sm:$0xff]  ;;  %v2755_v31 = vld [vmem:[#allocation49_spill] sm:$0xff] }
  0xfd   :  { %2746 = vst [vmem:[#allocation44_spill] sm:$0xff] %v2124_v63  ;;  %2748 = vst [vmem:[#allocation45_spill] sm:$0xff] %v2127_v16  ;;  %v314_v29 = vmul.f32 0.00390625, %v262_v62  ;;  %v499_v37 = vmul.f32 %v2124_v63, %v2124_v63  ;;  %v500_v49 = vmul.f32 %v2127_v16, %v2127_v16 }
  0xfe   :  { %v2138_v28 = vsub.f32 %v2749_v11, %v313_v33  ;;  %v2141_v55 = vsub.f32 %v2751_v51, %v313_v33  ;;  %v635_v60 = vadd.f32 %v498_v45, %v497_v17 }
  0xff   :  { %v2144_v57 = vsub.f32 %v2753_v43, %v314_v29  ;;  %v2147_v10 = vsub.f32 %v2755_v31, %v314_v29  ;;  %v265_v62 = vpop.xlane.xlu0 %264  ;;  %v638_v61 = vadd.f32 %v500_v49, %v499_v37  ;;  %v2761_v43 = vld [vmem:[#allocation51_spill] sm:$0xff] }
 0x100   :  { %2750 = vst [vmem:[#allocation46_spill] sm:$0xff] %v2138_v28  ;;  %2752 = vst [vmem:[#allocation47_spill] sm:$0xff] %v2141_v55  ;;  %v315_v56 = vmul.f32 0.00390625, %v265_v62  ;;  %633 = vadd.xlane.f32.xlu1 %v632_v39  ;;  %636 = vadd.xlane.f32.xlu0 %v635_v60  ;;  %v268_v63 = vpop.xlane.xlu1 %267  ;;  %v501_v11 = vmul.f32 %v2138_v28, %v2138_v28  ;;  %v502_v33 = vmul.f32 %v2141_v55, %v2141_v55  ;;  %v2758_v39 = vld [vmem:[#allocation50_spill] sm:$0xff] }
 0x101   :  { %2754 = vst [vmem:[#allocation48_spill] sm:$0xff] %v2144_v57  ;;  %2756 = vst [vmem:[#allocation49_spill] sm:$0xff] %v2147_v10  ;;  %v316_v51 = vmul.f32 0.00390625, %v268_v63  ;;  %v503_v17 = vmul.f32 %v2144_v57, %v2144_v57  ;;  %v504_v45 = vmul.f32 %v2147_v10, %v2147_v10 }
 0x102   :  { %v2158_v29 = vsub.f32 %v1685_v59, %v315_v56  ;;  %v2161_v60 = vsub.f32 %v2758_v39, %v315_v56  ;;  %v641_v37 = vadd.f32 %v502_v33, %v501_v11 }
 0x103   :  { %v2164_v49 = vsub.f32 %v1689_v53, %v316_v51  ;;  %v2167_v31 = vsub.f32 %v2761_v43, %v316_v51  ;;  %v644_v63 = vadd.f32 %v504_v45, %v503_v17  ;;  %v896_v17 = vlaneseq }
 0x104   :  { %2757 = vst [vmem:[#allocation62_spill] sm:$0xff] %v2158_v29  ;;  %2759 = vst [vmem:[#allocation50_spill] sm:$0xff] %v2161_v60  ;;  %639 = vadd.xlane.f32.xlu1 %v638_v61  ;;  %642 = vadd.xlane.f32.xlu0 %v641_v37  ;;  %v505_v62 = vmul.f32 %v2158_v29, %v2158_v29  ;;  %v506_v59 = vmul.f32 %v2161_v60, %v2161_v60 }
 0x105   :  { %2760 = vst [vmem:[#allocation63_spill] sm:$0xff] %v2164_v49  ;;  %2762 = vst [vmem:[#allocation51_spill] sm:$0xff] %v2167_v31  ;;  %v507_v56 = vmul.f32 %v2164_v49, %v2164_v49  ;;  %v508_v11 = vmul.f32 %v2167_v31, %v2167_v31  ;;  %v897_v29 = vshrl.u32 %v896_v17, 7 }
 0x106   :  { %v647_v53 = vadd.f32 %v506_v59, %v505_v62 }
 0x107   :  { %v650_v33 = vadd.f32 %v508_v11, %v507_v56  ;;  %v898_v59 = vsub.s32 0, %v897_v29  ;;  %v902_v56 = vsub.s32 1, %v897_v29  ;;  %v797_v11 = vld [vmem:[%s2516_s1] sm:$0x3]  ;;  %s1373_s1 = smov [#allocation5]  }
 0x108   :  { %645 = vadd.xlane.f32.xlu1 %v644_v63  ;;  %648 = vadd.xlane.f32.xlu0 %v647_v53 }
 0x10c   :  { %651 = vadd.xlane.f32.xlu1 %v650_v33 }
 0x139   :  { %v511_v61 = vpop.xlane.xlu0 %510 }
 0x13a   :  { %v653_v51 = vmul.f32 0.00390625, %v511_v61 }
 0x13c   :  { %v701_v45 = vadd.f32 1e-12, %v653_v51 }
 0x13d   :  { %v514_v39 = vpop.xlane.xlu1 %513  ;;  %v517_v37 = vpop.xlane.xlu0 %516 }
 0x13e   :  { %1226 = vrsqrt.f32 %v701_v45  ;;  %v654_v43 = vmul.f32 0.00390625, %v514_v39  ;;  %v655_v60 = vmul.f32 0.00390625, %v517_v37 }
 0x140   :  { %v702_v10 = vadd.f32 1e-12, %v654_v43  ;;  %v703_v49 = vadd.f32 1e-12, %v655_v60  ;;  %v798_v60 = vld [vmem:[%s2517_s2] sm:$0x3] }
 0x141   :  { %v520_v57 = vpop.xlane.xlu1 %519  ;;  %v523_v55 = vpop.xlane.xlu0 %522  ;;  %v2187_v39 = vrot.slane %v798_v60, %v898_v59  ;;  %v2189_v37 = vrot.slane %v798_v60, %v902_v56  ;;  %v2763_v43 = vld [vmem:[#allocation52_spill] sm:$0xff]  ;;  %s1210_s2 = sshll.u32 %s1373_s1, 4  ;;  %s1211_s2 = int_to_ptr.vmem [resolvable:$true] %s1210_s2 }
 0x142   :  { %1228 = vrsqrt.f32 %v702_v10  ;;  %v656_v62 = vmul.f32 0.00390625, %v520_v57  ;;  %v657_v63 = vmul.f32 0.00390625, %v523_v55  ;;  %v2183_v57 = vrot.slane %v797_v11, %v898_v59  ;;  %s1344_s29 = scalar_lea.vmem %s1211_s2, 12288  ;;  %p1349_p9 = scmp.lt.s32.totalorder %s1211_s2, %s1211_s2 }
 0x143   :  { %1230 = vrsqrt.f32 %v703_v49  ;;  %v2185_v55 = vrot.slane %v797_v11, %v902_v56  ;;  %p1345_p8 = scmp.ne.s32.totalorder %s1211_s2, %s1344_s29  ;;  %p1350_p10 = scmp.lt.s32.totalorder %s1344_s29, %s1344_s29 }
 0x144   :  { %v704_v53 = vadd.f32 1e-12, %v656_v62  ;;  %v705_v33 = vadd.f32 1e-12, %v657_v63  ;;  %v2764_v63 = vld [vmem:[#allocation53_spill] sm:$0xff] }
 0x145   :  { %v526_v61 = vpop.xlane.xlu1 %525  ;;  %v529_v51 = vpop.xlane.xlu0 %528  ;;  %p1351_p11 = por %p1350_p10, %p1349_p9 }
 0x146   :  { %1232 = vrsqrt.f32 %v704_v53  ;;  %v658_v17 = vmul.f32 0.00390625, %v526_v61  ;;  %v659_v10 = vmul.f32 0.00390625, %v529_v51 }
 0x147   :  { %1234 = vrsqrt.f32 %v705_v33  ;;  %p1352_p12 = pnand %p1351_p11, %p1345_p8 }
 0x148   :  { %v1227_v29 = vpop.eup %1226  ;;  %v706_v49 = vadd.f32 1e-12, %v658_v17  ;;  %v707_v45 = vadd.f32 1e-12, %v659_v10 }
 0x149   :  { %v799_v62 = vmul.f32 %v1227_v29, %v2763_v43  ;;  %v800_v31 = vmul.f32 %v1227_v29, %v2764_v63  ;;  %v532_v28 = vpop.xlane.xlu1 %531  ;;  %v535_v53 = vpop.xlane.xlu0 %534  ;;  %v2765_v63 = vld [vmem:[#allocation54_spill] sm:$0xff] }
 0x14a   :  { %1236 = vrsqrt.f32 %v706_v49  ;;  %v660_v61 = vmul.f32 0.00390625, %v532_v28  ;;  %v661_v51 = vmul.f32 0.00390625, %v535_v53 }
 0x14b   :  { %v906_v11 = vmul.f32 %v2183_v57, %v799_v62  ;;  %v907_v33 = vmul.f32 %v2185_v55, %v800_v31  ;;  %1238 = vrsqrt.f32 %v707_v45  ;;  %v2766_v62 = vld [vmem:[#allocation55_spill] sm:$0xff] }
 0x14c   :  { %v1229_v17 = vpop.eup %1228  ;;  %v708_v10 = vadd.f32 1e-12, %v660_v61  ;;  %v709_v59 = vadd.f32 1e-12, %v661_v51 }
 0x14d   :  { %v1231_v16 = vpop.eup %1230  ;;  %v1013_v56 = vadd.f32 %v2187_v39, %v906_v11  ;;  %v1014_v60 = vadd.f32 %v2189_v37, %v907_v33  ;;  %v801_v29 = vmul.f32 %v1229_v17, %v1718_v23  ;;  %v802_v43 = vmul.f32 %v1229_v17, %v1721_v4  ;;  %v538_v49 = vpop.xlane.xlu1 %537 }
 0x14e   :  { %v541_v28 = vpop.xlane.xlu0 %540  ;;  %v803_v53 = vmul.f32 %v1231_v16, %v2765_v63  ;;  %v804_v54 = vmul.f32 %v1231_v16, %v2766_v62  ;;  %1240 = vrsqrt.f32 %v708_v10  ;;  %v662_v31 = vmul.f32 0.00390625, %v538_v49 }
 0x14f   :  { %1109 = vst [vmem:[#allocation5] sm:$0xff] %v1013_v56  ;;  %1110 = vst [vmem:[#allocation5 + $0x8] sm:$0xff] %v1014_v60  ;;  %v908_v45 = vmul.f32 %v2183_v57, %v801_v29  ;;  %v909_v61 = vmul.f32 %v2185_v55, %v802_v43  ;;  %1242 = vrsqrt.f32 %v709_v59  ;;  %v663_v51 = vmul.f32 0.00390625, %v541_v28 }
 0x150   :  { %v1233_v11 = vpop.eup %1232  ;;  %v910_v23 = vmul.f32 %v2183_v57, %v803_v53  ;;  %v911_v4 = vmul.f32 %v2185_v55, %v804_v54  ;;  %v710_v33 = vadd.f32 1e-12, %v662_v31 }
 0x151   :  { %v1235_v17 = vpop.eup %1234  ;;  %v1015_v63 = vadd.f32 %v2187_v39, %v908_v45  ;;  %v1016_v16 = vadd.f32 %v2189_v37, %v909_v61  ;;  %v805_v10 = vmul.f32 %v1233_v11, %v1724_v7  ;;  %v806_v56 = vmul.f32 %v1233_v11, %v1727_v40  ;;  %v544_v60 = vpop.xlane.xlu1 %543 }
 0x152   :  { %v547_v29 = vpop.xlane.xlu0 %546  ;;  %v1017_v59 = vadd.f32 %v2187_v39, %v910_v23  ;;  %v1018_v43 = vadd.f32 %v2189_v37, %v911_v4  ;;  %v807_v49 = vmul.f32 %v1235_v17, %v1738_v9  ;;  %v808_v54 = vmul.f32 %v1235_v17, %v1741_v35 }
 0x153   :  { %1111 = vst [vmem:[#allocation5 + $0x10] sm:$0xff] %v1015_v63  ;;  %1112 = vst [vmem:[#allocation5 + $0x18] sm:$0xff] %v1016_v16  ;;  %v912_v28 = vmul.f32 %v2183_v57, %v805_v10  ;;  %v913_v53 = vmul.f32 %v2185_v55, %v806_v56  ;;  %1244 = vrsqrt.f32 %v710_v33  ;;  %v711_v7 = vadd.f32 1e-12, %v663_v51 }
 0x154   :  { %v1237_v62 = vpop.eup %1236  ;;  %1113 = vst [vmem:[#allocation5 + $0x20] sm:$0xff] %v1017_v59  ;;  %1114 = vst [vmem:[#allocation5 + $0x28] sm:$0xff] %v1018_v43  ;;  %v914_v40 = vmul.f32 %v2183_v57, %v807_v49  ;;  %v915_v31 = vmul.f32 %v2185_v55, %v808_v54  ;;  %v664_v45 = vmul.f32 0.00390625, %v544_v60  ;;  %v665_v61 = vmul.f32 0.00390625, %v547_v29 }
 0x155   :  { %v1239_v9 = vpop.eup %1238  ;;  %v1019_v35 = vadd.f32 %v2187_v39, %v912_v28  ;;  %v1020_v11 = vadd.f32 %v2189_v37, %v913_v53  ;;  %v809_v23 = vmul.f32 %v1237_v62, %v1744_v0  ;;  %v810_v4 = vmul.f32 %v1237_v62, %v1747_v1  ;;  %v550_v33 = vpop.xlane.xlu1 %549 }
 0x156   :  { %v553_v51 = vpop.xlane.xlu0 %552  ;;  %v1021_v17 = vadd.f32 %v2187_v39, %v914_v40  ;;  %v1022_v63 = vadd.f32 %v2189_v37, %v915_v31  ;;  %v811_v16 = vmul.f32 %v1239_v9, %v1758_v58  ;;  %v812_v10 = vmul.f32 %v1239_v9, %v1761_v41 }
 0x157   :  { %1115 = vst [vmem:[#allocation5 + $0x30] sm:$0xff] %v1019_v35  ;;  %1116 = vst [vmem:[#allocation5 + $0x38] sm:$0xff] %v1020_v11  ;;  %v916_v56 = vmul.f32 %v2183_v57, %v809_v23  ;;  %v917_v60 = vmul.f32 %v2185_v55, %v810_v4  ;;  %1246 = vrsqrt.f32 %v711_v7  ;;  %v712_v0 = vadd.f32 1e-12, %v664_v45 }
 0x158   :  { %v1241_v29 = vpop.eup %1240  ;;  %1117 = vst [vmem:[#allocation5 + $0x40] sm:$0xff] %v1021_v17  ;;  %1118 = vst [vmem:[#allocation5 + $0x48] sm:$0xff] %v1022_v63  ;;  %v918_v1 = vmul.f32 %v2183_v57, %v811_v16  ;;  %v919_v59 = vmul.f32 %v2185_v55, %v812_v10  ;;  %v713_v43 = vadd.f32 1e-12, %v665_v61  ;;  %v666_v49 = vmul.f32 0.00390625, %v550_v33 }
 0x159   :  { %v1243_v58 = vpop.eup %1242  ;;  %v1023_v41 = vadd.f32 %v2187_v39, %v916_v56  ;;  %v1024_v54 = vadd.f32 %v2189_v37, %v917_v60  ;;  %v813_v28 = vmul.f32 %v1241_v29, %v1764_v6  ;;  %v814_v53 = vmul.f32 %v1241_v29, %v1767_v52  ;;  %v556_v7 = vpop.xlane.xlu1 %555 }
 0x15a   :  { %v559_v62 = vpop.xlane.xlu0 %558  ;;  %v1025_v40 = vadd.f32 %v2187_v39, %v918_v1  ;;  %v1026_v31 = vadd.f32 %v2189_v37, %v919_v59  ;;  %v815_v45 = vmul.f32 %v1243_v58, %v1778_v12  ;;  %v816_v61 = vmul.f32 %v1243_v58, %v1781_v3 }
 0x15b   :  { %1119 = vst [vmem:[#allocation5 + $0x50] sm:$0xff] %v1023_v41  ;;  %1120 = vst [vmem:[#allocation5 + $0x58] sm:$0xff] %v1024_v54  ;;  %v920_v9 = vmul.f32 %v2183_v57, %v813_v28  ;;  %v921_v35 = vmul.f32 %v2185_v55, %v814_v53  ;;  %1248 = vrsqrt.f32 %v712_v0  ;;  %v714_v6 = vadd.f32 1e-12, %v666_v49 }
 0x15c   :  { %1121 = vst [vmem:[#allocation5 + $0x60] sm:$0xff] %v1025_v40  ;;  %1122 = vst [vmem:[#allocation5 + $0x68] sm:$0xff] %v1026_v31  ;;  %v922_v52 = vmul.f32 %v2183_v57, %v815_v45  ;;  %v923_v11 = vmul.f32 %v2185_v55, %v816_v61  ;;  %1250 = vrsqrt.f32 %v713_v43  ;;  %v667_v23 = vmul.f32 0.00390625, %v553_v51 }
 0x15d   :  { %v1245_v4 = vpop.eup %1244  ;;  %v1027_v12 = vadd.f32 %v2187_v39, %v920_v9  ;;  %v1028_v3 = vadd.f32 %v2189_v37, %v921_v35  ;;  %1252 = vrsqrt.f32 %v714_v6  ;;  %v668_v33 = vmul.f32 0.00390625, %v556_v7  ;;  %v562_v17 = vpop.xlane.xlu1 %561 }
 0x15e   :  { %v565_v63 = vpop.xlane.xlu0 %564  ;;  %v1029_v16 = vadd.f32 %v2187_v39, %v922_v52  ;;  %v1030_v10 = vadd.f32 %v2189_v37, %v923_v11  ;;  %v817_v56 = vmul.f32 %v1245_v4, %v1784_v34  ;;  %v818_v60 = vmul.f32 %v1245_v4, %v1787_v14 }
 0x15f   :  { %1123 = vst [vmem:[#allocation5 + $0x70] sm:$0xff] %v1027_v12  ;;  %1124 = vst [vmem:[#allocation5 + $0x78] sm:$0xff] %v1028_v3  ;;  %v715_v51 = vadd.f32 1e-12, %v667_v23  ;;  %v716_v0 = vadd.f32 1e-12, %v668_v33 }
 0x160   :  { %v669_v29 = vmul.f32 0.00390625, %v559_v62  ;;  %v670_v1 = vmul.f32 0.00390625, %v562_v17  ;;  %1125 = vst [vmem:[#allocation5 + $0x80] sm:$0xff] %v1029_v16  ;;  %1126 = vst [vmem:[#allocation5 + $0x88] sm:$0xff] %v1030_v10  ;;  %v924_v59 = vmul.f32 %v2183_v57, %v817_v56  ;;  %v925_v43 = vmul.f32 %v2185_v55, %v818_v60 }
 0x161   :  { %v671_v49 = vmul.f32 0.00390625, %v565_v63  ;;  %v1247_v58 = vpop.eup %1246  ;;  %1254 = vrsqrt.f32 %v715_v51  ;;  %v568_v34 = vpop.xlane.xlu1 %567 }
 0x162   :  { %v717_v41 = vadd.f32 1e-12, %v669_v29  ;;  %v718_v54 = vadd.f32 1e-12, %v670_v1  ;;  %v571_v28 = vpop.xlane.xlu0 %570  ;;  %v1031_v14 = vadd.f32 %v2187_v39, %v924_v59  ;;  %v1032_v53 = vadd.f32 %v2189_v37, %v925_v43 }
 0x163   :  { %v819_v7 = vmul.f32 %v1247_v58, %v1798_v18  ;;  %v820_v62 = vmul.f32 %v1247_v58, %v1801_v47  ;;  %1256 = vrsqrt.f32 %v716_v0  ;;  %v719_v40 = vadd.f32 1e-12, %v671_v49 }
 0x164   :  { %v672_v31 = vmul.f32 0.00390625, %v568_v34  ;;  %v673_v45 = vmul.f32 0.00390625, %v571_v28  ;;  %1127 = vst [vmem:[#allocation5 + $0x90] sm:$0xff] %v1031_v14  ;;  %1128 = vst [vmem:[#allocation5 + $0x98] sm:$0xff] %v1032_v53  ;;  %1258 = vrsqrt.f32 %v717_v41 }
 0x165   :  { %v926_v61 = vmul.f32 %v2183_v57, %v819_v7  ;;  %v927_v9 = vmul.f32 %v2185_v55, %v820_v62  ;;  %v1249_v35 = vpop.eup %1248  ;;  %1260 = vrsqrt.f32 %v718_v54  ;;  %v574_v11 = vpop.xlane.xlu1 %573 }
 0x166   :  { %v720_v6 = vadd.f32 1e-12, %v672_v31  ;;  %v721_v52 = vadd.f32 1e-12, %v673_v45  ;;  %v577_v23 = vpop.xlane.xlu0 %576  ;;  %v1251_v18 = vpop.eup %1250  ;;  %v821_v12 = vmul.f32 %v1249_v35, %v1804_v2  ;;  %v822_v3 = vmul.f32 %v1249_v35, %v1807_v20 }
 0x167   :  { %v1033_v47 = vadd.f32 %v2187_v39, %v926_v61  ;;  %v1034_v4 = vadd.f32 %v2189_v37, %v927_v9  ;;  %v1253_v33 = vpop.eup %1252  ;;  %v823_v17 = vmul.f32 %v1251_v18, %v1818_v24  ;;  %v824_v63 = vmul.f32 %v1251_v18, %v1821_v46 }
 0x168   :  { %1262 = vrsqrt.f32 %v719_v40  ;;  %v674_v16 = vmul.f32 0.00390625, %v574_v11  ;;  %v928_v10 = vmul.f32 %v2183_v57, %v821_v12  ;;  %v929_v56 = vmul.f32 %v2185_v55, %v822_v3 }
 0x169   :  { %1129 = vst [vmem:[#allocation5 + $0xa0] sm:$0xff] %v1033_v47  ;;  %1130 = vst [vmem:[#allocation5 + $0xa8] sm:$0xff] %v1034_v4  ;;  %v825_v60 = vmul.f32 %v1253_v33, %v1824_v22  ;;  %v826_v51 = vmul.f32 %v1253_v33, %v1827_v26  ;;  %v930_v2 = vmul.f32 %v2183_v57, %v823_v17  ;;  %1264 = vrsqrt.f32 %v720_v6  ;;  %v580_v0 = vpop.xlane.xlu1 %579 }
 0x16a   :  { %v931_v20 = vmul.f32 %v2185_v55, %v824_v63  ;;  %v722_v24 = vadd.f32 1e-12, %v674_v16  ;;  %v583_v46 = vpop.xlane.xlu0 %582  ;;  %v1035_v29 = vadd.f32 %v2187_v39, %v928_v10  ;;  %v1036_v1 = vadd.f32 %v2189_v37, %v929_v56 }
 0x16b   :  { %v932_v59 = vmul.f32 %v2183_v57, %v825_v60  ;;  %v933_v43 = vmul.f32 %v2185_v55, %v826_v51  ;;  %v1255_v49 = vpop.eup %1254  ;;  %v1037_v22 = vadd.f32 %v2187_v39, %v930_v2  ;;  %1266 = vrsqrt.f32 %v721_v52 }
 0x16c   :  { %v1038_v26 = vadd.f32 %v2189_v37, %v931_v20  ;;  %v675_v58 = vmul.f32 0.00390625, %v577_v23  ;;  %1131 = vst [vmem:[#allocation5 + $0xb0] sm:$0xff] %v1035_v29  ;;  %1132 = vst [vmem:[#allocation5 + $0xb8] sm:$0xff] %v1036_v1  ;;  %v827_v34 = vmul.f32 %v1255_v49, %v1838_v30  ;;  %v828_v28 = vmul.f32 %v1255_v49, %v1841_v8 }
 0x16d   :  { %v1039_v41 = vadd.f32 %v2187_v39, %v932_v59  ;;  %v1040_v54 = vadd.f32 %v2189_v37, %v933_v43  ;;  %v1257_v14 = vpop.eup %1256  ;;  %1133 = vst [vmem:[#allocation5 + $0xc0] sm:$0xff] %v1037_v22  ;;  %1268 = vrsqrt.f32 %v722_v24  ;;  %v676_v7 = vmul.f32 0.00390625, %v580_v0  ;;  %v586_v40 = vpop.xlane.xlu1 %585 }
 0x16e   :  { %1134 = vst [vmem:[#allocation5 + $0xc8] sm:$0xff] %v1038_v26  ;;  %v723_v53 = vadd.f32 1e-12, %v675_v58  ;;  %v677_v62 = vmul.f32 0.00390625, %v583_v46  ;;  %v2277_v31 = vpop.xlane.xlu0 %588  ;;  %v1259_v45 = vpop.eup %1258  ;;  %v934_v61 = vmul.f32 %v2183_v57, %v827_v34  ;;  %v935_v9 = vmul.f32 %v2185_v55, %v828_v28 }
 0x16f   :  { %1135 = vst [vmem:[#allocation5 + $0xd0] sm:$0xff] %v1039_v41  ;;  %1136 = vst [vmem:[#allocation5 + $0xd8] sm:$0xff] %v1040_v54  ;;  %v829_v30 = vmul.f32 %v1257_v14, %v1844_v5  ;;  %v830_v8 = vmul.f32 %v1257_v14, %v1847_v32  ;;  %v1261_v35 = vpop.eup %1260  ;;  %v831_v6 = vmul.f32 %v1259_v45, %v1858_v36  ;;  %v724_v11 = vadd.f32 1e-12, %v676_v7 }
 0x170   :  { %v832_v52 = vmul.f32 %v1259_v45, %v1861_v15  ;;  %1270 = vrsqrt.f32 %v723_v53  ;;  %v1041_v23 = vadd.f32 %v2187_v39, %v934_v61  ;;  %v1042_v18 = vadd.f32 %v2189_v37, %v935_v9 }
 0x171   :  { %v936_v47 = vmul.f32 %v2183_v57, %v829_v30  ;;  %v937_v4 = vmul.f32 %v2185_v55, %v830_v8  ;;  %v938_v5 = vmul.f32 %v2183_v57, %v831_v6  ;;  %v833_v3 = vmul.f32 %v1261_v35, %v1864_v13  ;;  %v2293_v15 = vpop.xlane.xlu1 %591  ;;  %v2767_v30 = vld [vmem:[#allocation56_spill] sm:$0xff]  ;;  %v2768_v8 = vld [vmem:[#allocation57_spill] sm:$0xff] }
 0x172   :  { %v1263_v12 = vpop.eup %1262  ;;  %v939_v32 = vmul.f32 %v2185_v55, %v832_v52  ;;  %v834_v36 = vmul.f32 %v1261_v35, %v1867_v38  ;;  %v2295_v33 = vpop.xlane.xlu0 %594  ;;  %1137 = vst [vmem:[#allocation5 + $0xe0] sm:$0xff] %v1041_v23  ;;  %1138 = vst [vmem:[#allocation5 + $0xe8] sm:$0xff] %v1042_v18  ;;  %1272 = vrsqrt.f32 %v724_v11  ;;  %v725_v29 = vadd.f32 1e-12, %v677_v62 }
 0x173   :  { %v1043_v17 = vadd.f32 %v2187_v39, %v936_v47  ;;  %v1044_v63 = vadd.f32 %v2189_v37, %v937_v4  ;;  %v835_v16 = vmul.f32 %v1263_v12, %v1878_v42  ;;  %v836_v10 = vmul.f32 %v1263_v12, %v1881_v21  ;;  %v1265_v56 = vpop.eup %1264 }
 0x174   :  { %v1045_v60 = vadd.f32 %v2187_v39, %v938_v5  ;;  %v1046_v13 = vadd.f32 %v2189_v37, %v939_v32  ;;  %v940_v38 = vmul.f32 %v2183_v57, %v833_v3  ;;  %v941_v51 = vmul.f32 %v2185_v55, %v834_v36 }
 0x175   :  { %1139 = vst [vmem:[#allocation5 + $0xf0] sm:$0xff] %v1043_v17  ;;  %1140 = vst [vmem:[#allocation5 + $0xf8] sm:$0xff] %v1044_v63  ;;  %v942_v2 = vmul.f32 %v2183_v57, %v835_v16  ;;  %v943_v20 = vmul.f32 %v2185_v55, %v836_v10  ;;  %v837_v24 = vmul.f32 %v1265_v56, %v1884_v19  ;;  %v1267_v21 = vpop.eup %1266  ;;  %v598_v1 = vpop.xlane.xlu1 %597  ;;  %1274 = vrsqrt.f32 %v725_v29  ;;  %v2772_v29 = vld [vmem:[#allocation61_spill] sm:$0xff] }
 0x176   :  { %v838_v42 = vmul.f32 %v1265_v56, %v1887_v44  ;;  %1141 = vst [vmem:[#allocation5 + $0x100] sm:$0xff] %v1045_v60  ;;  %1142 = vst [vmem:[#allocation5 + $0x108] sm:$0xff] %v1046_v13  ;;  %v1047_v0 = vadd.f32 %v2187_v39, %v940_v38  ;;  %v1048_v46 = vadd.f32 %v2189_v37, %v941_v51  ;;  %v601_v59 = vpop.xlane.xlu0 %600  ;;  %v678_v41 = vmul.f32 0.00390625, %v586_v40  ;;  %v2769_v56 = vld [vmem:[#allocation58_spill] sm:$0xff] }
 0x177   :  { %v1049_v43 = vadd.f32 %v2187_v39, %v942_v2  ;;  %v1050_v49 = vadd.f32 %v2189_v37, %v943_v20  ;;  %v944_v22 = vmul.f32 %v2183_v57, %v837_v24  ;;  %v1269_v44 = vpop.eup %1268  ;;  %v839_v26 = vmul.f32 %v1267_v21, %v1898_v48 }
 0x178   :  { %v945_v19 = vmul.f32 %v2185_v55, %v838_v42  ;;  %1143 = vst [vmem:[#allocation5 + $0x110] sm:$0xff] %v1047_v0  ;;  %1144 = vst [vmem:[#allocation5 + $0x118] sm:$0xff] %v1048_v46  ;;  %v840_v58 = vmul.f32 %v1267_v21, %v1901_v27  ;;  %v841_v28 = vmul.f32 %v1269_v44, %v1904_v25  ;;  %v726_v48 = vadd.f32 1e-12, %v678_v41  ;;  %v2771_v0 = vld [vmem:[#allocation60_spill] sm:$0xff] }
 0x179   :  { %1145 = vst [vmem:[#allocation5 + $0x120] sm:$0xff] %v1049_v43  ;;  %1146 = vst [vmem:[#allocation5 + $0x128] sm:$0xff] %v1050_v49  ;;  %v1051_v54 = vadd.f32 %v2187_v39, %v944_v22  ;;  %v842_v14 = vmul.f32 %v1269_v44, %v1907_v50  ;;  %v946_v7 = vmul.f32 %v2183_v57, %v839_v26  ;;  %v679_v27 = vmul.f32 0.00390625, %v2277_v31  ;;  %v604_v45 = vpop.xlane.xlu1 %603 }
 0x17a   :  { %v1052_v34 = vadd.f32 %v2189_v37, %v945_v19  ;;  %v1271_v53 = vpop.eup %1270  ;;  %v947_v62 = vmul.f32 %v2185_v55, %v840_v58  ;;  %v607_v40 = vpop.xlane.xlu0 %606  ;;  %v948_v61 = vmul.f32 %v2183_v57, %v841_v28  ;;  %1276 = vrsqrt.f32 %v726_v48 }
 0x17b   :  { %1147 = vst [vmem:[#allocation5 + $0x130] sm:$0xff] %v1051_v54  ;;  %v949_v9 = vmul.f32 %v2185_v55, %v842_v14  ;;  %v843_v25 = vmul.f32 %v1271_v53, %v2767_v30  ;;  %v844_v50 = vmul.f32 %v1271_v53, %v2768_v8  ;;  %v1053_v35 = vadd.f32 %v2187_v39, %v946_v7 }
 0x17c   :  { %1148 = vst [vmem:[#allocation5 + $0x138] sm:$0xff] %v1052_v34  ;;  %v1054_v6 = vadd.f32 %v2189_v37, %v947_v62  ;;  %v727_v52 = vadd.f32 1e-12, %v679_v27  ;;  %v1055_v31 = vadd.f32 %v2187_v39, %v948_v61  ;;  %v680_v47 = vmul.f32 0.00390625, %v2293_v15  ;;  %v1273_v17 = vpop.eup %1272  ;;  %v2770_v15 = vld [vmem:[#allocation59_spill] sm:$0xff]  ;;  %v2773_v62 = vld [vmem:[#allocation8_spill] sm:$0xff] }
 0x17d   :  { %v1056_v11 = vadd.f32 %v2189_v37, %v949_v9  ;;  %v950_v23 = vmul.f32 %v2183_v57, %v843_v25  ;;  %v951_v18 = vmul.f32 %v2185_v55, %v844_v50  ;;  %1149 = vst [vmem:[#allocation5 + $0x140] sm:$0xff] %v1053_v35  ;;  %v681_v4 = vmul.f32 0.00390625, %v2295_v33  ;;  %v610_v5 = vpop.xlane.xlu1 %609  ;;  %v2774_v27 = vld [vmem:[#allocation9_spill] sm:$0xff]  ;;  %v2775_v50 = vld [vmem:[#allocation10_spill] sm:$0xff] }
 0x17e   :  { %1150 = vst [vmem:[#allocation5 + $0x148] sm:$0xff] %v1054_v6  ;;  %1278 = vrsqrt.f32 %v727_v52  ;;  %v682_v12 = vmul.f32 0.00390625, %v598_v1  ;;  %v613_v32 = vpop.xlane.xlu0 %612  ;;  %1151 = vst [vmem:[#allocation5 + $0x150] sm:$0xff] %v1055_v31  ;;  %v728_v63 = vadd.f32 1e-12, %v680_v47  ;;  %v683_v10 = vmul.f32 0.00390625, %v601_v59 }
 0x17f   :  { %1152 = vst [vmem:[#allocation5 + $0x158] sm:$0xff] %v1056_v11  ;;  %v1057_v3 = vadd.f32 %v2187_v39, %v950_v23  ;;  %v1058_v36 = vadd.f32 %v2189_v37, %v951_v18  ;;  %v729_v16 = vadd.f32 1e-12, %v681_v4  ;;  %v845_v60 = vmul.f32 %v1273_v17, %v2769_v56  ;;  %v1275_v33 = vpop.eup %1274  ;;  %v2776_v6 = vld [vmem:[#allocation11_spill] sm:$0xff]  ;;  %v2777_v56 = vld [vmem:[#allocation12_spill] sm:$0xff] }
 0x180   :  { %v846_v13 = vmul.f32 %v1273_v17, %v2770_v15  ;;  %1280 = vrsqrt.f32 %v728_v63  ;;  %v730_v38 = vadd.f32 1e-12, %v682_v12  ;;  %v684_v51 = vmul.f32 0.00390625, %v604_v45  ;;  %v2778_v15 = vld [vmem:[#allocation13_spill] sm:$0xff] }
 0x181   :  { %1153 = vst [vmem:[#allocation5 + $0x160] sm:$0xff] %v1057_v3  ;;  %1154 = vst [vmem:[#allocation5 + $0x168] sm:$0xff] %v1058_v36  ;;  %v685_v2 = vmul.f32 0.00390625, %v607_v40  ;;  %v616_v20 = vpop.xlane.xlu1 %615  ;;  %v952_v42 = vmul.f32 %v2183_v57, %v845_v60  ;;  %v847_v46 = vmul.f32 %v1275_v33, %v2771_v0  ;;  %v848_v1 = vmul.f32 %v1275_v33, %v2772_v29  ;;  %v2779_v0 = vld [vmem:[#allocation14_spill] sm:$0xff]  ;;  %v2780_v29 = vld [vmem:[#allocation15_spill] sm:$0xff] }
 0x182   :  { %v619_v24 = vpop.xlane.xlu0 %618  ;;  %v953_v21 = vmul.f32 %v2185_v55, %v846_v13  ;;  %1282 = vrsqrt.f32 %v729_v16  ;;  %v731_v59 = vadd.f32 1e-12, %v683_v10  ;;  %v686_v43 = vmul.f32 0.00390625, %v610_v5 }
 0x183   :  { %v687_v49 = vmul.f32 0.00390625, %v613_v32  ;;  %v1059_v22 = vadd.f32 %v2187_v39, %v952_v42  ;;  %v954_v44 = vmul.f32 %v2183_v57, %v847_v46  ;;  %v955_v26 = vmul.f32 %v2185_v55, %v848_v1 }
 0x184   :  { %v1060_v19 = vadd.f32 %v2189_v37, %v953_v21  ;;  %v1277_v58 = vpop.eup %1276  ;;  %1284 = vrsqrt.f32 %v730_v38  ;;  %v732_v41 = vadd.f32 1e-12, %v684_v51  ;;  %v733_v54 = vadd.f32 1e-12, %v685_v2 }
 0x185   :  { %v688_v34 = vmul.f32 0.00390625, %v616_v20  ;;  %v622_v28 = vpop.xlane.xlu1 %621  ;;  %1155 = vst [vmem:[#allocation5 + $0x170] sm:$0xff] %v1059_v22  ;;  %v1061_v53 = vadd.f32 %v2187_v39, %v954_v44  ;;  %v1062_v7 = vadd.f32 %v2189_v37, %v955_v26  ;;  %v849_v48 = vmul.f32 %v1277_v58, %v2773_v62 }
 0x186   :  { %v625_v14 = vpop.xlane.xlu0 %624  ;;  %1156 = vst [vmem:[#allocation5 + $0x178] sm:$0xff] %v1060_v19  ;;  %v850_v45 = vmul.f32 %v1277_v58, %v2774_v27  ;;  %1286 = vrsqrt.f32 %v731_v59  ;;  %v734_v61 = vadd.f32 1e-12, %v686_v43  ;;  %v735_v9 = vadd.f32 1e-12, %v687_v49 }
 0x187   :  { %v689_v30 = vmul.f32 0.00390625, %v619_v24  ;;  %1157 = vst [vmem:[#allocation5 + $0x180] sm:$0xff] %v1061_v53  ;;  %1158 = vst [vmem:[#allocation5 + $0x188] sm:$0xff] %v1062_v7  ;;  %v956_v25 = vmul.f32 %v2183_v57, %v849_v48  ;;  %1288 = vrsqrt.f32 %v732_v41  ;;  %v736_v31 = vadd.f32 1e-12, %v688_v34  ;;  %v2783_v48 = vld [vmem:[#allocation18_spill] sm:$0xff] }
 0x188   :  { %v1279_v40 = vpop.eup %1278  ;;  %v957_v8 = vmul.f32 %v2185_v55, %v850_v45  ;;  %v690_v11 = vmul.f32 0.00390625, %v622_v28  ;;  %v691_v23 = vmul.f32 0.00390625, %v625_v14  ;;  %1290 = vrsqrt.f32 %v733_v54  ;;  %v2781_v54 = vld [vmem:[#allocation16_spill] sm:$0xff]  ;;  %v2782_v28 = vld [vmem:[#allocation17_spill] sm:$0xff]  ;;  %v2784_v45 = vld [vmem:[#allocation19_spill] sm:$0xff] }
 0x189   :  { %v851_v35 = vmul.f32 %v1279_v40, %v2775_v50  ;;  %v852_v52 = vmul.f32 %v1279_v40, %v2776_v6  ;;  %v628_v18 = vpop.xlane.xlu1 %627  ;;  %v1063_v4 = vadd.f32 %v2187_v39, %v956_v25  ;;  %v737_v36 = vadd.f32 1e-12, %v689_v30  ;;  %v2785_v6 = vld [vmem:[#allocation20_spill] sm:$0xff] }
 0x18a   :  { %v631_v47 = vpop.xlane.xlu0 %630  ;;  %v1064_v12 = vadd.f32 %v2189_v37, %v957_v8  ;;  %v1281_v3 = vpop.eup %1280  ;;  %v692_v17 = vmul.f32 0.00390625, %v628_v18  ;;  %1292 = vrsqrt.f32 %v734_v61  ;;  %v738_v38 = vadd.f32 1e-12, %v690_v11 }
 0x18b   :  { %v958_v5 = vmul.f32 %v2183_v57, %v851_v35  ;;  %v959_v32 = vmul.f32 %v2185_v55, %v852_v52  ;;  %v693_v63 = vmul.f32 0.00390625, %v631_v47  ;;  %1159 = vst [vmem:[#allocation5 + $0x190] sm:$0xff] %v1063_v4  ;;  %v853_v60 = vmul.f32 %v1281_v3, %v2777_v56 }
 0x18c   :  { %1160 = vst [vmem:[#allocation5 + $0x198] sm:$0xff] %v1064_v12  ;;  %v854_v13 = vmul.f32 %v1281_v3, %v2778_v15  ;;  %v1283_v33 = vpop.eup %1282  ;;  %v739_v51 = vadd.f32 1e-12, %v691_v23  ;;  %v2364_v2 = vadd.f32 1e-12, %v692_v17  ;;  %1294 = vrsqrt.f32 %v735_v9 }
 0x18d   :  { %v1065_v16 = vadd.f32 %v2187_v39, %v958_v5  ;;  %v1066_v10 = vadd.f32 %v2189_v37, %v959_v32  ;;  %v634_v20 = vpop.xlane.xlu1 %633  ;;  %v960_v42 = vmul.f32 %v2183_v57, %v853_v60  ;;  %v855_v46 = vmul.f32 %v1283_v33, %v2779_v0 }
 0x18e   :  { %v637_v24 = vpop.xlane.xlu0 %636  ;;  %v961_v21 = vmul.f32 %v2185_v55, %v854_v13  ;;  %v856_v1 = vmul.f32 %v1283_v33, %v2780_v29  ;;  %v1285_v59 = vpop.eup %1284  ;;  %v2370_v43 = vadd.f32 1e-12, %v693_v63  ;;  %v694_v49 = vmul.f32 0.00390625, %v634_v20  ;;  %v2787_v63 = vld [vmem:[#allocation22_spill] sm:$0xff]  ;;  %v2789_v33 = vld [vmem:[#allocation24_spill] sm:$0xff]  ;;  %v2790_v20 = vld [vmem:[#allocation25_spill] sm:$0xff] }
 0x18f   :  { %1161 = vst [vmem:[#allocation5 + $0x1a0] sm:$0xff] %v1065_v16  ;;  %1162 = vst [vmem:[#allocation5 + $0x1a8] sm:$0xff] %v1066_v10  ;;  %v695_v22 = vmul.f32 0.00390625, %v637_v24  ;;  %v1067_v19 = vadd.f32 %v2187_v39, %v960_v42  ;;  %v962_v26 = vmul.f32 %v2183_v57, %v855_v46  ;;  %v857_v34 = vmul.f32 %v1285_v59, %v2781_v54  ;;  %v2788_v10 = vld [vmem:[#allocation23_spill] sm:$0xff] }
 0x190   :  { %v1068_v44 = vadd.f32 %v2189_v37, %v961_v21  ;;  %v963_v58 = vmul.f32 %v2185_v55, %v856_v1  ;;  %v1287_v41 = vpop.eup %1286  ;;  %v858_v14 = vmul.f32 %v1285_v59, %v2782_v28  ;;  %1296 = vrsqrt.f32 %v736_v31  ;;  %v2786_v31 = vld [vmem:[#allocation21_spill] sm:$0xff]  ;;  %v2791_v1 = vld [vmem:[#allocation26_spill] sm:$0xff] }
 0x191   :  { %v2378_v53 = vadd.f32 1e-12, %v694_v49  ;;  %1163 = vst [vmem:[#allocation5 + $0x1b0] sm:$0xff] %v1067_v19  ;;  %v1069_v7 = vadd.f32 %v2187_v39, %v962_v26  ;;  %v859_v27 = vmul.f32 %v1287_v41, %v2783_v48  ;;  %v860_v40 = vmul.f32 %v1287_v41, %v2784_v45  ;;  %v640_v61 = vpop.xlane.xlu1 %639  ;;  %v1289_v9 = vpop.eup %1288  ;;  %v2792_v49 = vld [vmem:[#allocation27_spill] sm:$0xff]  ;;  %v2794_v48 = vld [vmem:[#allocation29_spill] sm:$0xff] }
 0x192   :  { %1164 = vst [vmem:[#allocation5 + $0x1b8] sm:$0xff] %v1068_v44  ;;  %v1070_v62 = vadd.f32 %v2189_v37, %v963_v58  ;;  %v964_v30 = vmul.f32 %v2183_v57, %v857_v34  ;;  %v965_v25 = vmul.f32 %v2185_v55, %v858_v14  ;;  %1298 = vrsqrt.f32 %v737_v36  ;;  %v1291_v23 = vpop.eup %1290  ;;  %v643_v36 = vpop.xlane.xlu0 %642 }
 0x193   :  { %v2386_v8 = vadd.f32 1e-12, %v695_v22  ;;  %1165 = vst [vmem:[#allocation5 + $0x1c0] sm:$0xff] %v1069_v7  ;;  %v966_v50 = vmul.f32 %v2183_v57, %v859_v27  ;;  %v967_v35 = vmul.f32 %v2185_v55, %v860_v40  ;;  %v861_v52 = vmul.f32 %v1289_v9, %v2785_v6  ;;  %v2793_v7 = vld [vmem:[#allocation28_spill] sm:$0xff] }
 0x194   :  { %1166 = vst [vmem:[#allocation5 + $0x1c8] sm:$0xff] %v1070_v62  ;;  %v862_v11 = vmul.f32 %v1289_v9, %v2786_v31  ;;  %v1071_v18 = vadd.f32 %v2187_v39, %v964_v30  ;;  %v1072_v47 = vadd.f32 %v2189_v37, %v965_v25  ;;  %1300 = vrsqrt.f32 %v738_v38  ;;  %v1293_v17 = vpop.eup %1292  ;;  %v2796_v30 = vld [vmem:[#allocation31_spill] sm:$0xff] }
 0x195   :  { %v696_v4 = vmul.f32 0.00390625, %v640_v61  ;;  %v1073_v12 = vadd.f32 %v2187_v39, %v966_v50  ;;  %v1074_v5 = vadd.f32 %v2189_v37, %v967_v35  ;;  %v968_v32 = vmul.f32 %v2183_v57, %v861_v52  ;;  %v646_v19 = vpop.xlane.xlu1 %645  ;;  %v2795_v61 = vld [vmem:[#allocation30_spill] sm:$0xff] }
 0x196   :  { %v969_v3 = vmul.f32 %v2185_v55, %v862_v11  ;;  %1167 = vst [vmem:[#allocation5 + $0x1d0] sm:$0xff] %v1071_v18  ;;  %1168 = vst [vmem:[#allocation5 + $0x1d8] sm:$0xff] %v1072_v47  ;;  %v863_v16 = vmul.f32 %v1291_v23, %v2787_v63  ;;  %v864_v56 = vmul.f32 %v1291_v23, %v2788_v10  ;;  %1302 = vrsqrt.f32 %v739_v51  ;;  %v1295_v42 = vpop.eup %1294  ;;  %v649_v50 = vpop.xlane.xlu0 %648  ;;  %v2797_v23 = vld [vmem:[#allocation32_spill] sm:$0xff]  ;;  %v2798_v47 = vld [vmem:[#allocation33_spill] sm:$0xff] }
 0x197   :  { %v744_v60 = vadd.f32 1e-12, %v696_v4  ;;  %1169 = vst [vmem:[#allocation5 + $0x1e0] sm:$0xff] %v1073_v12  ;;  %1170 = vst [vmem:[#allocation5 + $0x1e8] sm:$0xff] %v1074_v5  ;;  %v1075_v15 = vadd.f32 %v2187_v39, %v968_v32  ;;  %v865_v38 = vmul.f32 %v1293_v17, %v2789_v33  ;;  %v866_v24 = vmul.f32 %v1293_v17, %v2790_v20 }
 0x198   :  { %v1076_v13 = vadd.f32 %v2189_v37, %v969_v3  ;;  %v970_v21 = vmul.f32 %v2183_v57, %v863_v16  ;;  %v971_v0 = vmul.f32 %v2185_v55, %v864_v56  ;;  %1304 = vrsqrt.f32 %v2364_v2  ;;  %v2799_v56 = vld [vmem:[#allocation34_spill] sm:$0xff] }
 0x199   :  { %v697_v46 = vmul.f32 0.00390625, %v643_v36  ;;  %1171 = vst [vmem:[#allocation5 + $0x1f0] sm:$0xff] %v1075_v15  ;;  %v972_v51 = vmul.f32 %v2183_v57, %v865_v38  ;;  %v973_v29 = vmul.f32 %v2185_v55, %v866_v24  ;;  %v867_v59 = vmul.f32 %v1295_v42, %v2791_v1  ;;  %v652_v16 = vpop.xlane.xlu1 %651  ;;  %v2801_v24 = vld [vmem:[#allocation36_spill] sm:$0xff] }
 0x19a   :  { %1172 = vst [vmem:[#allocation5 + $0x1f8] sm:$0xff] %v1076_v13  ;;  %v868_v22 = vmul.f32 %v1295_v42, %v2792_v49  ;;  %v1297_v44 = vpop.eup %1296  ;;  %v1077_v26 = vadd.f32 %v2187_v39, %v970_v21  ;;  %v1078_v58 = vadd.f32 %v2189_v37, %v971_v0  ;;  %1306 = vrsqrt.f32 %v2370_v43  ;;  %v2800_v13 = vld [vmem:[#allocation35_spill] sm:$0xff]  ;;  %v2802_v21 = vld [vmem:[#allocation37_spill] sm:$0xff] }
 0x19b   :  { %v745_v2 = vadd.f32 1e-12, %v697_v46  ;;  %v1079_v41 = vadd.f32 %v2187_v39, %v972_v51  ;;  %v1080_v54 = vadd.f32 %v2189_v37, %v973_v29  ;;  %v974_v34 = vmul.f32 %v2183_v57, %v867_v59 }
 0x19c   :  { %v975_v28 = vmul.f32 %v2185_v55, %v868_v22  ;;  %v1299_v14 = vpop.eup %1298  ;;  %1173 = vst [vmem:[#allocation5 + $0x200] sm:$0xff] %v1077_v26  ;;  %1174 = vst [vmem:[#allocation5 + $0x208] sm:$0xff] %v1078_v58  ;;  %v869_v62 = vmul.f32 %v1297_v44, %v2793_v7  ;;  %v870_v27 = vmul.f32 %v1297_v44, %v2794_v48  ;;  %1308 = vrsqrt.f32 %v2378_v53  ;;  %v2803_v22 = vld [vmem:[#allocation38_spill] sm:$0xff]  ;;  %v2804_v44 = vld [vmem:[#allocation39_spill] sm:$0xff] }
 0x19d   :  { %v698_v45 = vmul.f32 0.00390625, %v646_v19  ;;  %1175 = vst [vmem:[#allocation5 + $0x210] sm:$0xff] %v1079_v41  ;;  %1176 = vst [vmem:[#allocation5 + $0x218] sm:$0xff] %v1080_v54  ;;  %v1081_v43 = vadd.f32 %v2187_v39, %v974_v34  ;;  %v871_v9 = vmul.f32 %v1299_v14, %v2795_v61  ;;  %v872_v25 = vmul.f32 %v1299_v14, %v2796_v30  ;;  %v2805_v48 = vld [vmem:[#allocation40_spill] sm:$0xff] }
 0x19e   :  { %v1082_v40 = vadd.f32 %v2189_v37, %v975_v28  ;;  %v1301_v35 = vpop.eup %1300  ;;  %v976_v6 = vmul.f32 %v2183_v57, %v869_v62  ;;  %v977_v52 = vmul.f32 %v2185_v55, %v870_v27  ;;  %1310 = vrsqrt.f32 %v2386_v8 }
 0x19f   :  { %v746_v53 = vadd.f32 1e-12, %v698_v45  ;;  %1177 = vst [vmem:[#allocation5 + $0x220] sm:$0xff] %v1081_v43  ;;  %v978_v31 = vmul.f32 %v2183_v57, %v871_v9  ;;  %v979_v11 = vmul.f32 %v2185_v55, %v872_v25  ;;  %v873_v18 = vmul.f32 %v1301_v35, %v2797_v23  ;;  %v2806_v45 = vld [vmem:[#allocation41_spill] sm:$0xff]  ;;  %v2807_v9 = vld [vmem:[#allocation42_spill] sm:$0xff]  ;;  %v2808_v25 = vld [vmem:[#allocation43_spill] sm:$0xff] }
 0x1a0   :  { %1178 = vst [vmem:[#allocation5 + $0x228] sm:$0xff] %v1082_v40  ;;  %v874_v4 = vmul.f32 %v1301_v35, %v2798_v47  ;;  %v1303_v12 = vpop.eup %1302  ;;  %v1083_v5 = vadd.f32 %v2187_v39, %v976_v6  ;;  %v1084_v32 = vadd.f32 %v2189_v37, %v977_v52  ;;  %1312 = vrsqrt.f32 %v744_v60 }
 0x1a1   :  { %v699_v3 = vmul.f32 0.00390625, %v649_v50  ;;  %v1085_v8 = vadd.f32 %v2187_v39, %v978_v31  ;;  %v1086_v36 = vadd.f32 %v2189_v37, %v979_v11  ;;  %v980_v17 = vmul.f32 %v2183_v57, %v873_v18  ;;  %v2809_v11 = vld [vmem:[#allocation44_spill] sm:$0xff]  ;;  %v2810_v18 = vld [vmem:[#allocation45_spill] sm:$0xff] }
 0x1a2   :  { %v981_v63 = vmul.f32 %v2185_v55, %v874_v4  ;;  %v1305_v10 = vpop.eup %1304  ;;  %1179 = vst [vmem:[#allocation5 + $0x230] sm:$0xff] %v1083_v5  ;;  %1180 = vst [vmem:[#allocation5 + $0x238] sm:$0xff] %v1084_v32  ;;  %v875_v15 = vmul.f32 %v1303_v12, %v2799_v56  ;;  %v876_v33 = vmul.f32 %v1303_v12, %v2800_v13  ;;  %1314 = vrsqrt.f32 %v745_v2 }
 0x1a3   :  { %v747_v38 = vadd.f32 1e-12, %v699_v3  ;;  %1181 = vst [vmem:[#allocation5 + $0x240] sm:$0xff] %v1085_v8  ;;  %1182 = vst [vmem:[#allocation5 + $0x248] sm:$0xff] %v1086_v36  ;;  %v1087_v60 = vadd.f32 %v2187_v39, %v980_v17  ;;  %v877_v42 = vmul.f32 %v1305_v10, %v2801_v24  ;;  %v878_v0 = vmul.f32 %v1305_v10, %v2802_v21  ;;  %v2812_v10 = vld [vmem:[#allocation47_spill] sm:$0xff] }
 0x1a4   :  { %v1088_v20 = vadd.f32 %v2189_v37, %v981_v63  ;;  %v1307_v46 = vpop.eup %1306  ;;  %v982_v51 = vmul.f32 %v2183_v57, %v875_v15  ;;  %v983_v29 = vmul.f32 %v2185_v55, %v876_v33  ;;  %1316 = vrsqrt.f32 %v746_v53  ;;  %v2811_v63 = vld [vmem:[#allocation46_spill] sm:$0xff]  ;;  %v2813_v33 = vld [vmem:[#allocation48_spill] sm:$0xff] }
 0x1a5   :  { %v700_v1 = vmul.f32 0.00390625, %v652_v16  ;;  %1183 = vst [vmem:[#allocation5 + $0x250] sm:$0xff] %v1087_v60  ;;  %v984_v59 = vmul.f32 %v2183_v57, %v877_v42  ;;  %v985_v49 = vmul.f32 %v2185_v55, %v878_v0  ;;  %v879_v19 = vmul.f32 %v1307_v46, %v2803_v22  ;;  %v2814_v60 = vld [vmem:[#allocation49_spill] sm:$0xff] }
 0x1a6   :  { %1184 = vst [vmem:[#allocation5 + $0x258] sm:$0xff] %v1088_v20  ;;  %v880_v26 = vmul.f32 %v1307_v46, %v2804_v44  ;;  %v1309_v58 = vpop.eup %1308  ;;  %v1089_v2 = vadd.f32 %v2187_v39, %v982_v51  ;;  %v1090_v41 = vadd.f32 %v2189_v37, %v983_v29  ;;  %1318 = vrsqrt.f32 %v747_v38  ;;  %v2815_v51 = vld [vmem:[#allocation62_spill] sm:$0xff] }
 0x1a7   :  { %v748_v54 = vadd.f32 1e-12, %v700_v1  ;;  %v1091_v34 = vadd.f32 %v2187_v39, %v984_v59  ;;  %v1092_v28 = vadd.f32 %v2189_v37, %v985_v49  ;;  %v986_v14 = vmul.f32 %v2183_v57, %v879_v19  ;;  %v2816_v1 = vld [vmem:[#allocation50_spill] sm:$0xff] }
 0x1a8   :  { %v987_v7 = vmul.f32 %v2185_v55, %v880_v26  ;;  %v1311_v62 = vpop.eup %1310  ;;  %1185 = vst [vmem:[#allocation5 + $0x260] sm:$0xff] %v1089_v2  ;;  %1186 = vst [vmem:[#allocation5 + $0x268] sm:$0xff] %v1090_v41  ;;  %v881_v27 = vmul.f32 %v1309_v58, %v2805_v48  ;;  %v882_v43 = vmul.f32 %v1309_v58, %v2806_v45  ;;  %v2817_v41 = vld [vmem:[#allocation63_spill] sm:$0xff] }
 0x1a9   :  { %1320 = vrsqrt.f32 %v748_v54  ;;  %1187 = vst [vmem:[#allocation5 + $0x270] sm:$0xff] %v1091_v34  ;;  %1188 = vst [vmem:[#allocation5 + $0x278] sm:$0xff] %v1092_v28  ;;  %v1093_v40 = vadd.f32 %v2187_v39, %v986_v14  ;;  %v883_v30 = vmul.f32 %v1311_v62, %v2807_v9  ;;  %v884_v50 = vmul.f32 %v1311_v62, %v2808_v25  ;;  %v2818_v34 = vld [vmem:[#allocation51_spill] sm:$0xff] }
 0x1aa   :  { %v1094_v61 = vadd.f32 %v2189_v37, %v987_v7  ;;  %v1313_v35 = vpop.eup %1312  ;;  %v988_v6 = vmul.f32 %v2183_v57, %v881_v27  ;;  %v989_v52 = vmul.f32 %v2185_v55, %v882_v43 }
 0x1ab   :  { %1189 = vst [vmem:[#allocation5 + $0x280] sm:$0xff] %v1093_v40  ;;  %v990_v53 = vmul.f32 %v2183_v57, %v883_v30  ;;  %v991_v31 = vmul.f32 %v2185_v55, %v884_v50  ;;  %v885_v23 = vmul.f32 %v1313_v35, %v2809_v11  ;;  %v886_v47 = vmul.f32 %v1313_v35, %v2810_v18 }
 0x1ac   :  { %1190 = vst [vmem:[#allocation5 + $0x288] sm:$0xff] %v1094_v61  ;;  %v1315_v4 = vpop.eup %1314  ;;  %v1095_v12 = vadd.f32 %v2187_v39, %v988_v6  ;;  %v1096_v5 = vadd.f32 %v2189_v37, %v989_v52 }
 0x1ad   :  { %v1097_v32 = vadd.f32 %v2187_v39, %v990_v53  ;;  %v1098_v3 = vadd.f32 %v2189_v37, %v991_v31  ;;  %v992_v8 = vmul.f32 %v2183_v57, %v885_v23  ;;  %v993_v36 = vmul.f32 %v2185_v55, %v886_v47 }
 0x1ae   :  { %v1317_v17 = vpop.eup %1316  ;;  %1191 = vst [vmem:[#allocation5 + $0x290] sm:$0xff] %v1095_v12  ;;  %1192 = vst [vmem:[#allocation5 + $0x298] sm:$0xff] %v1096_v5  ;;  %v887_v16 = vmul.f32 %v1315_v4, %v2811_v63  ;;  %v888_v56 = vmul.f32 %v1315_v4, %v2812_v10 }
 0x1af   :  { %1193 = vst [vmem:[#allocation5 + $0x2a0] sm:$0xff] %v1097_v32  ;;  %1194 = vst [vmem:[#allocation5 + $0x2a8] sm:$0xff] %v1098_v3  ;;  %v1099_v15 = vadd.f32 %v2187_v39, %v992_v8  ;;  %v1100_v13 = vadd.f32 %v2189_v37, %v993_v36  ;;  %v889_v38 = vmul.f32 %v1317_v17, %v2813_v33 }
 0x1b0   :  { %v890_v20 = vmul.f32 %v1317_v17, %v2814_v60  ;;  %v1319_v24 = vpop.eup %1318  ;;  %v994_v42 = vmul.f32 %v2183_v57, %v887_v16  ;;  %v995_v21 = vmul.f32 %v2185_v55, %v888_v56 }
 0x1b1   :  { %1195 = vst [vmem:[#allocation5 + $0x2b0] sm:$0xff] %v1099_v15  ;;  %1196 = vst [vmem:[#allocation5 + $0x2b8] sm:$0xff] %v1100_v13  ;;  %v996_v0 = vmul.f32 %v2183_v57, %v889_v38  ;;  %v891_v29 = vmul.f32 %v1319_v24, %v2815_v51  ;;  %v892_v59 = vmul.f32 %v1319_v24, %v2816_v1 }
 0x1b2   :  { %v997_v46 = vmul.f32 %v2185_v55, %v890_v20  ;;  %v1101_v22 = vadd.f32 %v2187_v39, %v994_v42  ;;  %v1102_v19 = vadd.f32 %v2189_v37, %v995_v21 }
 0x1b3   :  { %v1321_v49 = vpop.eup %1320  ;;  %v1103_v44 = vadd.f32 %v2187_v39, %v996_v0  ;;  %v998_v58 = vmul.f32 %v2183_v57, %v891_v29  ;;  %v999_v2 = vmul.f32 %v2185_v55, %v892_v59 }
 0x1b4   :  { %v1104_v26 = vadd.f32 %v2189_v37, %v997_v46  ;;  %1197 = vst [vmem:[#allocation5 + $0x2c0] sm:$0xff] %v1101_v22  ;;  %1198 = vst [vmem:[#allocation5 + $0x2c8] sm:$0xff] %v1102_v19  ;;  %v893_v54 = vmul.f32 %v1321_v49, %v2817_v41  ;;  %v894_v28 = vmul.f32 %v1321_v49, %v2818_v34 }
 0x1b5   :  { %1199 = vst [vmem:[#allocation5 + $0x2d0] sm:$0xff] %v1103_v44  ;;  %v1105_v14 = vadd.f32 %v2187_v39, %v998_v58  ;;  %v1106_v7 = vadd.f32 %v2189_v37, %v999_v2 }
 0x1b6   :  { %1200 = vst [vmem:[#allocation5 + $0x2d8] sm:$0xff] %v1104_v26  ;;  %v1000_v62 = vmul.f32 %v2183_v57, %v893_v54  ;;  %v1001_v48 = vmul.f32 %v2185_v55, %v894_v28 }
 0x1b7   :  { %1201 = vst [vmem:[#allocation5 + $0x2e0] sm:$0xff] %v1105_v14  ;;  %1202 = vst [vmem:[#allocation5 + $0x2e8] sm:$0xff] %v1106_v7 }
 0x1b8   :  { %v1107_v27 = vadd.f32 %v2187_v39, %v1000_v62  ;;  %v1108_v45 = vadd.f32 %v2189_v37, %v1001_v48 }
 0x1ba   :  { %1203 = vst [vmem:[#allocation5 + $0x2f0] sm:$0xff] %v1107_v27  ;;  %1204 = vst [vmem:[#allocation5 + $0x2f8] sm:$0xff] %v1108_v45 }
 0x1bb   :  { %1355 = shalt.err (!%p1352_p12)
}
 0x1bc   :  { %s1356_s5 = scalar_lea.hbm %s2518_s3, 12288 }
 0x1bd   :  { %p1357_p13 = scmp.ne.s32.totalorder %s2518_s3, %s1356_s5  ;;  %p1360_p0 = scmp.lt.u32.totalorder %s1356_s5, %s2518_s3 }
 0x1bf   :  { %p1362_p1 = pnand %p1360_p0, %p1357_p13 }
 0x1c1   :  { %1365 = shalt.err (!%p1362_p1)
}
 0x1c2   :  { %1216 = dma.vmem_to_hbm [thread:$0]  %s1211_s2, 12288, %s2518_s3, [#allocation4], %s1371_s22, %s1371_s22, %s1372_s23  }
 0x1c3   :  { %1368 = dma.done.wait [#allocation4], 12288  }
 0x1c4   :  { %1369 = vsyncadd [#allocation4], 4294955008 }
 0x1c5   :  { %1220 = vsyncpa [#allocation3], 1 }
 0x1c6   :  { %1221 = vsyncpa [#allocation4], 1 }

</bundles_post_ra>
